<compile_context>
chip_gen: v7x
topology: tpu7x:2x2x1
jax: 0.10.0
libtpu: 0.0.40
codegen_flags: <defaults>
</compile_context>

<pallas_src>
import jax
import jax.numpy as jnp
from jax import lax
from jax.experimental import pallas as pl
from jax.experimental.pallas import tpu as pltpu

F32 = jnp.float32
_VMEM = pl.BlockSpec(memory_space=pltpu.MemorySpace.VMEM)


# ----------------------------- Pallas kernels ------------------------------

def _conv_matmul_t_kernel(w_ref, x_ref, scale_ref, shift_ref, o_ref):
    # o (cout, M) = (W (cout,K) @ patches^T (K,M)) * scale (cout,1) + shift (cout,1)
    acc = jnp.dot(w_ref[...], x_ref[...], preferred_element_type=jnp.float32)
    o_ref[...] = acc * scale_ref[...] + shift_ref[...]


def conv_matmul_t(wf, patches, scale, shift):
    cout, K = wf.shape
    Kp, M = patches.shape
    assert K == Kp
    return pl.pallas_call(
        _conv_matmul_t_kernel,
        out_shape=jax.ShapeDtypeStruct((cout, M), F32),
        in_specs=[_VMEM] * 4,
        out_specs=_VMEM,
    )(wf, patches, scale, shift)


def _tail_fc_kernel(a_ref, c_ref, ppt_ref, s00_ref, s01_ref, s10_ref, s11_ref,
                    v_ref, m_ref, g_ref, r_ref, b_ref, o_ref):
    # a_ref : (N*C, 324)  conv1+bn1 branch, (h*18+w)-flattened per (n,c) row
    # c_ref : (N*C, 100)  conv3 branch,    (h*10+w)-flattened per (n,c) row
    f32 = jnp.float32
    # AdaptiveAvgPool2d 10 -> 18 over both spatial dims: right-multiply by kron(P,P)^T.
    y = jnp.dot(c_ref[...], ppt_ref[...], preferred_element_type=f32)      # (NC, 324)
    # add + ReLU
    z = jnp.maximum(a_ref[...] + y, 0.0)                                   # (NC, 324)
    # MaxPool2d(k=2,s=2,p=1): max over the 4 single-element candidate selections.
    p00 = jnp.dot(z, s00_ref[...], preferred_element_type=f32)
    p01 = jnp.dot(z, s01_ref[...], preferred_element_type=f32)
    p10 = jnp.dot(z, s10_ref[...], preferred_element_type=f32)
    p11 = jnp.dot(z, s11_ref[...], preferred_element_type=f32)
    pooled = jnp.maximum(jnp.maximum(p00, p01), jnp.maximum(p10, p11))     # (NC, 100)
    # Fused Linear(1600 -> nclass) without an in-kernel reshape:
    #   out[n,o] = sum_{c,w} pooled[(n,c),w] * Wfc[o, c*100+w]
    #            = ( G @ ((pooled @ Vcat) * Mask) @ R ) [n,o] + b[o]
    partial = jnp.dot(pooled, v_ref[...], preferred_element_type=f32) * m_ref[...]
    grouped = jnp.dot(g_ref[...], partial, preferred_element_type=f32)     # (N, C*nclass)
    o_ref[...] = jnp.dot(grouped, r_ref[...], preferred_element_type=f32) + b_ref[...]


def tail_fc(a2, c2, ppt, s00, s01, s10, s11, vcat, mask, g, r, b):
    N = g.shape[0]
    nclass = r.shape[1]
    return pl.pallas_call(
        _tail_fc_kernel,
        out_shape=jax.ShapeDtypeStruct((N, nclass), F32),
        in_specs=[_VMEM] * 12,
        out_specs=_VMEM,
    )(a2, c2, ppt, s00, s01, s10, s11, vcat, mask, g, r, b)


# ------------------------------- glue (JAX) ---------------------------------

def im2col_t(x_cnhw, kh, kw, stride, pad):
    # x: (C, N, H, W) -> patches^T (C*kh*kw, N*OH*OW); row index = c*kh*kw + i*kw + j
    x = jnp.pad(x_cnhw, ((0, 0), (0, 0), (pad, pad), (pad, pad)))
    C, N, H, W = x.shape
    OH = (H - kh) // stride + 1
    OW = (W - kw) // stride + 1
    cols = []
    for i in range(kh):
        for j in range(kw):
            cols.append(x[:, :, i:i + stride * OH:stride, j:j + stride * OW:stride])
    p = jnp.stack(cols, axis=1)                        # (C, kh*kw, N, OH, OW)
    return p.reshape(C * kh * kw, N * OH * OW), OH, OW


def conv2d_affine_t(x_cnhw, w, scale, shift, stride, pad):
    # Conv2d (CNHW activation, OIHW weight) fused with a per-output-channel affine.
    cout, cin, kh, kw = w.shape
    N = x_cnhw.shape[1]
    patches, OH, OW = im2col_t(x_cnhw, kh, kw, stride, pad)
    wf = w.reshape(cout, cin * kh * kw)
    out = conv_matmul_t(wf, patches, scale.reshape(cout, 1), shift.reshape(cout, 1))
    return out.reshape(cout, N, OH, OW)                # stays CNHW


def adaptive_avg_matrix(in_size, out_size):
    # Matches torch.nn.AdaptiveAvgPool2d bin edges (works for up- and down-sampling).
    P = [[0.0] * in_size for _ in range(out_size)]
    for i in range(out_size):
        s = (i * in_size) // out_size
        e = ((i + 1) * in_size + out_size - 1) // out_size
        for h in range(s, e):
            P[i][h] = 1.0 / (e - s)
    return jnp.array(P, dtype=F32)


def maxpool_selectors(in_size, k=2, stride=2, pad=1):
    # Two single-element selector matrices; clamping replaces the -inf pad exactly.
    out_size = (in_size + 2 * pad - k) // stride + 1
    a = [[0.0] * in_size for _ in range(out_size)]
    b = [[0.0] * in_size for _ in range(out_size)]
    for i in range(out_size):
        r0 = min(max(i * stride - pad, 0), in_size - 1)
        r1 = min(max(i * stride - pad + 1, 0), in_size - 1)
        a[i][r0] = 1.0
        b[i][r1] = 1.0
    return jnp.array(a, dtype=F32), jnp.array(b, dtype=F32)


def init_params(key):
    ks = jax.random.split(key, 16)
    def n(k, shape, scale=0.1):
        return jax.random.normal(k, shape, dtype=F32) * scale
    def u(k, shape):
        return jax.random.uniform(k, shape, dtype=F32, minval=0.5, maxval=1.5)
    return dict(
        w1=n(ks[0], (16, 3, 2, 2)),
        bn1_g=u(ks[1], (16,)), bn1_b=n(ks[2], (16,)),
        bn1_m=n(ks[3], (16,)), bn1_v=u(ks[4], (16,)),
        w2=n(ks[5], (8, 3, 3, 3)), b2=n(ks[6], (8,)),
        bn2_g=u(ks[7], (8,)), bn2_b=n(ks[8], (8,)),
        bn2_m=n(ks[9], (8,)), bn2_v=u(ks[10], (8,)),
        w3=n(ks[11], (16, 8, 3, 3)), b3=n(ks[12], (16,)),
        wfc=n(ks[13], (3, 1600), 0.02), bfc=n(ks[14], (3,)),
    )


@jax.jit
def two_inputs_forward(x1_in, x2_in, p):
    eps = 1e-5
    N = x1_in.shape[0]

    # NCHW -> CNHW once; everything conv-related stays channel-major afterwards.
    x1 = jnp.transpose(x1_in, (1, 0, 2, 3))
    x2 = jnp.transpose(x2_in, (1, 0, 2, 3))

    # conv1 (no bias) + bn1 (eval, folded)
    s1 = p["bn1_g"] / jnp.sqrt(p["bn1_v"] + eps)
    t1 = p["bn1_b"] - p["bn1_m"] * s1
    a = conv2d_affine_t(x1, p["w1"], s1, t1, stride=2, pad=2)        # (16,N,18,18)

    # conv2 (bias) + bn2 (eval, folded)
    s2 = p["bn2_g"] / jnp.sqrt(p["bn2_v"] + eps)
    t2 = p["bn2_b"] + (p["b2"] - p["bn2_m"]) * s2
    c = conv2d_affine_t(x2, p["w2"], s2, t2, stride=2, pad=2)        # (8,N,17,17)

    # conv3 (bias only); unit scale
    cout3 = p["w3"].shape[0]
    c = conv2d_affine_t(c, p["w3"], jnp.ones((cout3,), F32), p["b3"],
                        stride=2, pad=2)                             # (16,N,10,10)

    C = cout3
    HA = a.shape[2]                                                  # 18
    HC = c.shape[2]                                                  # 10

    # (n, c)-major flat slabs for the single fused tail+FC kernel.
    a2 = jnp.transpose(a, (1, 0, 2, 3)).reshape(N * C, HA * HA)      # (N*16, 324)
    c2 = jnp.transpose(c, (1, 0, 2, 3)).reshape(N * C, HC * HC)      # (N*16, 100)

    # Pooling matrices (constant-folded under jit).
    P = adaptive_avg_matrix(HC, HA)                                  # (18,10)
    PPt = jnp.kron(P, P).T                                           # (100,324)
    Ra, Rb = maxpool_selectors(HA)                                   # (10,18) each
    S00 = jnp.kron(Ra, Ra).T                                         # (324,100)
    S01 = jnp.kron(Ra, Rb).T
    S10 = jnp.kron(Rb, Ra).T
    S11 = jnp.kron(Rb, Rb).T

    # FC folding helpers: PyTorch flatten order is (c, h, w) per sample.
    nclass = p["wfc"].shape[0]
    po = Ra.shape[0]                                                 # 10
    hw = po * po                                                     # 100
    Vcat = jnp.transpose(p["wfc"].reshape(nclass, C, hw), (2, 1, 0)).reshape(hw, C * nclass)
    Mask = jnp.tile(jnp.repeat(jnp.eye(C, dtype=F32), nclass, axis=1), (N, 1))  # (N*C, C*ncls)
    G = jnp.kron(jnp.eye(N, dtype=F32), jnp.ones((1, C), F32))                  # (N, N*C)
    R = jnp.tile(jnp.eye(nclass, dtype=F32), (C, 1))                            # (C*ncls, ncls)

    return tail_fc(a2, c2, PPt, S00, S01, S10, S11, Vcat, Mask, G, R,
                   p["bfc"].reshape(1, nclass))                      # (N, nclass)


# --------------------------- pure-JAX reference ------------------------------

@jax.jit
def reference_forward(x1_in, x2_in, p):
    eps = 1e-5
    hi = lax.Precision.HIGHEST

    def conv(x, w, stride, pad, b=None):
        y = lax.conv_general_dilated(
            x, w, (stride, stride), ((pad, pad), (pad, pad)),
            dimension_numbers=("NCHW", "OIHW", "NCHW"), precision=hi)
        if b is not None:
            y = y + b[None, :, None, None]
        return y

    def bn(x, g, b, m, v):
        return (x - m[None, :, None, None]) * (
            g[None, :, None, None] / jnp.sqrt(v[None, :, None, None] + eps)
        ) + b[None, :, None, None]

    a = bn(conv(x1_in, p["w1"], 2, 2), p["bn1_g"], p["bn1_b"], p["bn1_m"], p["bn1_v"])
    c = bn(conv(x2_in, p["w2"], 2, 2, p["b2"]), p["bn2_g"], p["bn2_b"], p["bn2_m"], p["bn2_v"])
    c = conv(c, p["w3"], 2, 2, p["b3"])

    H = c.shape[2]
    rows = []
    for i in range(18):
        s, e = (i * H) // 18, ((i + 1) * H + 17) // 18
        rows.append(c[:, :, s:e, :].mean(axis=2, keepdims=True))
    c = jnp.concatenate(rows, axis=2)
    W = c.shape[3]
    cols = []
    for j in range(18):
        s, e = (j * W) // 18, ((j + 1) * W + 17) // 18
        cols.append(c[:, :, :, s:e].mean(axis=3, keepdims=True))
    c = jnp.concatenate(cols, axis=3)

    z = jax.nn.relu(a + c)
    zp = jnp.pad(z, ((0, 0), (0, 0), (1, 1), (1, 1)), constant_values=-jnp.inf)
    mp = lax.reduce_window(zp, -jnp.inf, lax.max, (1, 1, 2, 2), (1, 1, 2, 2), "VALID")
    flat = mp.reshape(mp.shape[0], -1)
    return jnp.dot(flat, p["wfc"].T, precision=hi) + p["bfc"]


if __name__ == "__main__":
    key = jax.random.PRNGKey(0)
    kp, k1, k2 = jax.random.split(key, 3)
    params = init_params(kp)
    # Spatial size 32x32 is forced by the module: conv1 must emit 18x18 to match
    # the AdaptiveAvgPool2d(18) branch, and the FC expects 16*10*10 = 1600 features.
    x1_in = jax.random.normal(k1, (2, 3, 32, 32), dtype=F32)
    x2_in = jax.random.normal(k2, (2, 3, 32, 32), dtype=F32)

    out = jax.block_until_ready(two_inputs_forward(x1_in, x2_in, params))
    ref = jax.block_until_ready(reference_forward(x1_in, x2_in, params))

    assert out.shape == (2, 3), out.shape
    assert bool(jnp.allclose(out, ref, rtol=2e-3, atol=2e-3)), (out, ref)
    print("KERNEL_OK")
</pallas_src>

<mosaic_0001>
module attributes {stable_mosaic.version = 11 : i64} {
  func.func @_conv_matmul_t_kernel(%arg0: memref<8x27xf32, #tpu.memory_space<vmem>>, %arg1: memref<27x578xf32, #tpu.memory_space<vmem>>, %arg2: memref<8x1xf32, #tpu.memory_space<vmem>>, %arg3: memref<8x1xf32, #tpu.memory_space<vmem>>, %arg4: memref<8x578xf32, #tpu.memory_space<vmem>>) attributes {dimension_semantics = [], scalar_prefetch = 0 : i64, scratch_operands = 0 : i64, tpu.core_type = #tpu.core_type<tc>} {
    %c0 = arith.constant 0 : index
    %c0_0 = arith.constant 0 : index
    %0 = vector.load %arg0[%c0, %c0_0] : memref<8x27xf32, #tpu.memory_space<vmem>>, vector<8x27xf32>
    %c0_1 = arith.constant 0 : index
    %c0_2 = arith.constant 0 : index
    %1 = vector.load %arg1[%c0_1, %c0_2] : memref<27x578xf32, #tpu.memory_space<vmem>>, vector<27x578xf32>
    %cst = arith.constant dense<0.000000e+00> : vector<8x578xf32>
    %2 = tpu.matmul %0, %1, %cst {dimension_numbers = #tpu.dot_dimension_numbers<[1], [0], [0], [1], [0, 0, 1, 1], [], []>} : vector<8x27xf32>, vector<27x578xf32>, vector<8x578xf32> -> vector<8x578xf32>
    %c0_3 = arith.constant 0 : index
    %c0_4 = arith.constant 0 : index
    %3 = vector.load %arg2[%c0_3, %c0_4] : memref<8x1xf32, #tpu.memory_space<vmem>>, vector<8x1xf32>
    %4 = vector.broadcast %3 : vector<8x1xf32> to vector<8x578xf32>
    %5 = arith.mulf %2, %4 : vector<8x578xf32>
    %c0_5 = arith.constant 0 : index
    %c0_6 = arith.constant 0 : index
    %6 = vector.load %arg3[%c0_5, %c0_6] : memref<8x1xf32, #tpu.memory_space<vmem>>, vector<8x1xf32>
    %7 = vector.broadcast %6 : vector<8x1xf32> to vector<8x578xf32>
    %8 = arith.addf %5, %7 : vector<8x578xf32>
    %c0_7 = arith.constant 0 : index
    %c0_8 = arith.constant 0 : index
    %9 = vector.load %arg4[%c0_7, %c0_8] : memref<8x578xf32, #tpu.memory_space<vmem>>, vector<8x578xf32>
    tpu.vector_store %arg4[%c0_7, %c0_8], %8 {strides = array<i32>} : memref<8x578xf32, #tpu.memory_space<vmem>>, vector<8x578xf32>,
    return
  }
}

module attributes {stable_mosaic.version = 11 : i64} {
  func.func @_conv_matmul_t_kernel(%arg0: memref<16x72xf32, #tpu.memory_space<vmem>>, %arg1: memref<72x200xf32, #tpu.memory_space<vmem>>, %arg2: memref<16x1xf32, #tpu.memory_space<vmem>>, %arg3: memref<16x1xf32, #tpu.memory_space<vmem>>, %arg4: memref<16x200xf32, #tpu.memory_space<vmem>>) attributes {dimension_semantics = [], scalar_prefetch = 0 : i64, scratch_operands = 0 : i64, tpu.core_type = #tpu.core_type<tc>} {
    %c0 = arith.constant 0 : index
    %c0_0 = arith.constant 0 : index
    %0 = vector.load %arg0[%c0, %c0_0] : memref<16x72xf32, #tpu.memory_space<vmem>>, vector<16x72xf32>
    %c0_1 = arith.constant 0 : index
    %c0_2 = arith.constant 0 : index
    %1 = vector.load %arg1[%c0_1, %c0_2] : memref<72x200xf32, #tpu.memory_space<vmem>>, vector<72x200xf32>
    %cst = arith.constant dense<0.000000e+00> : vector<16x200xf32>
    %2 = tpu.matmul %0, %1, %cst {dimension_numbers = #tpu.dot_dimension_numbers<[1], [0], [0], [1], [0, 0, 1, 1], [], []>} : vector<16x72xf32>, vector<72x200xf32>, vector<16x200xf32> -> vector<16x200xf32>
    %c0_3 = arith.constant 0 : index
    %c0_4 = arith.constant 0 : index
    %3 = vector.load %arg2[%c0_3, %c0_4] : memref<16x1xf32, #tpu.memory_space<vmem>>, vector<16x1xf32>
    %4 = vector.broadcast %3 : vector<16x1xf32> to vector<16x200xf32>
    %5 = arith.mulf %2, %4 : vector<16x200xf32>
    %c0_5 = arith.constant 0 : index
    %c0_6 = arith.constant 0 : index
    %6 = vector.load %arg3[%c0_5, %c0_6] : memref<16x1xf32, #tpu.memory_space<vmem>>, vector<16x1xf32>
    %7 = vector.broadcast %6 : vector<16x1xf32> to vector<16x200xf32>
    %8 = arith.addf %5, %7 : vector<16x200xf32>
    %c0_7 = arith.constant 0 : index
    %c0_8 = arith.constant 0 : index
    %9 = vector.load %arg4[%c0_7, %c0_8] : memref<16x200xf32, #tpu.memory_space<vmem>>, vector<16x200xf32>
    tpu.vector_store %arg4[%c0_7, %c0_8], %8 {strides = array<i32>} : memref<16x200xf32, #tpu.memory_space<vmem>>, vector<16x200xf32>,
    return
  }
}

module attributes {stable_mosaic.version = 11 : i64} {
  func.func @_conv_matmul_t_kernel(%arg0: memref<16x12xf32, #tpu.memory_space<vmem>>, %arg1: memref<12x648xf32, #tpu.memory_space<vmem>>, %arg2: memref<16x1xf32, #tpu.memory_space<vmem>>, %arg3: memref<16x1xf32, #tpu.memory_space<vmem>>, %arg4: memref<16x648xf32, #tpu.memory_space<vmem>>) attributes {dimension_semantics = [], scalar_prefetch = 0 : i64, scratch_operands = 0 : i64, tpu.core_type = #tpu.core_type<tc>} {
    %c0 = arith.constant 0 : index
    %c0_0 = arith.constant 0 : index
    %0 = vector.load %arg0[%c0, %c0_0] : memref<16x12xf32, #tpu.memory_space<vmem>>, vector<16x12xf32>
    %c0_1 = arith.constant 0 : index
    %c0_2 = arith.constant 0 : index
    %1 = vector.load %arg1[%c0_1, %c0_2] : memref<12x648xf32, #tpu.memory_space<vmem>>, vector<12x648xf32>
    %cst = arith.constant dense<0.000000e+00> : vector<16x648xf32>
    %2 = tpu.matmul %0, %1, %cst {dimension_numbers = #tpu.dot_dimension_numbers<[1], [0], [0], [1], [0, 0, 1, 1], [], []>} : vector<16x12xf32>, vector<12x648xf32>, vector<16x648xf32> -> vector<16x648xf32>
    %c0_3 = arith.constant 0 : index
    %c0_4 = arith.constant 0 : index
    %3 = vector.load %arg2[%c0_3, %c0_4] : memref<16x1xf32, #tpu.memory_space<vmem>>, vector<16x1xf32>
    %4 = vector.broadcast %3 : vector<16x1xf32> to vector<16x648xf32>
    %5 = arith.mulf %2, %4 : vector<16x648xf32>
    %c0_5 = arith.constant 0 : index
    %c0_6 = arith.constant 0 : index
    %6 = vector.load %arg3[%c0_5, %c0_6] : memref<16x1xf32, #tpu.memory_space<vmem>>, vector<16x1xf32>
    %7 = vector.broadcast %6 : vector<16x1xf32> to vector<16x648xf32>
    %8 = arith.addf %5, %7 : vector<16x648xf32>
    %c0_7 = arith.constant 0 : index
    %c0_8 = arith.constant 0 : index
    %9 = vector.load %arg4[%c0_7, %c0_8] : memref<16x648xf32, #tpu.memory_space<vmem>>, vector<16x648xf32>
    tpu.vector_store %arg4[%c0_7, %c0_8], %8 {strides = array<i32>} : memref<16x648xf32, #tpu.memory_space<vmem>>, vector<16x648xf32>,
    return
  }
}

module attributes {stable_mosaic.version = 11 : i64} {
  func.func @_tail_fc_kernel(%arg0: memref<32x324xf32, #tpu.memory_space<vmem>>, %arg1: memref<32x100xf32, #tpu.memory_space<vmem>>, %arg2: memref<100x324xf32, #tpu.memory_space<vmem>>, %arg3: memref<324x100xf32, #tpu.memory_space<vmem>>, %arg4: memref<324x100xf32, #tpu.memory_space<vmem>>, %arg5: memref<324x100xf32, #tpu.memory_space<vmem>>, %arg6: memref<324x100xf32, #tpu.memory_space<vmem>>, %arg7: memref<100x48xf32, #tpu.memory_space<vmem>>, %arg8: memref<32x48xf32, #tpu.memory_space<vmem>>, %arg9: memref<2x32xf32, #tpu.memory_space<vmem>>, %arg10: memref<48x3xf32, #tpu.memory_space<vmem>>, %arg11: memref<1x3xf32, #tpu.memory_space<vmem>>, %arg12: memref<2x3xf32, #tpu.memory_space<vmem>>) attributes {dimension_semantics = [], scalar_prefetch = 0 : i64, scratch_operands = 0 : i64, tpu.core_type = #tpu.core_type<tc>} {
    %c0 = arith.constant 0 : index
    %c0_0 = arith.constant 0 : index
    %0 = vector.load %arg1[%c0, %c0_0] : memref<32x100xf32, #tpu.memory_space<vmem>>, vector<32x100xf32>
    %c0_1 = arith.constant 0 : index
    %c0_2 = arith.constant 0 : index
    %1 = vector.load %arg2[%c0_1, %c0_2] : memref<100x324xf32, #tpu.memory_space<vmem>>, vector<100x324xf32>
    %cst = arith.constant dense<0.000000e+00> : vector<32x324xf32>
    %2 = tpu.matmul %0, %1, %cst {dimension_numbers = #tpu.dot_dimension_numbers<[1], [0], [0], [1], [0, 0, 1, 1], [], []>} : vector<32x100xf32>, vector<100x324xf32>, vector<32x324xf32> -> vector<32x324xf32>
    %c0_3 = arith.constant 0 : index
    %c0_4 = arith.constant 0 : index
    %3 = vector.load %arg0[%c0_3, %c0_4] : memref<32x324xf32, #tpu.memory_space<vmem>>, vector<32x324xf32>
    %4 = arith.addf %3, %2 : vector<32x324xf32>
    %cst_5 = arith.constant 0.000000e+00 : f32
    %5 = vector.broadcast %cst_5 : f32 to vector<32x324xf32>
    %6 = arith.maximumf %4, %5 : vector<32x324xf32>
    %c0_6 = arith.constant 0 : index
    %c0_7 = arith.constant 0 : index
    %7 = vector.load %arg3[%c0_6, %c0_7] : memref<324x100xf32, #tpu.memory_space<vmem>>, vector<324x100xf32>
    %cst_8 = arith.constant dense<0.000000e+00> : vector<32x100xf32>
    %8 = tpu.matmul %6, %7, %cst_8 {dimension_numbers = #tpu.dot_dimension_numbers<[1], [0], [0], [1], [0, 0, 1, 1], [], []>} : vector<32x324xf32>, vector<324x100xf32>, vector<32x100xf32> -> vector<32x100xf32>
    %c0_9 = arith.constant 0 : index
    %c0_10 = arith.constant 0 : index
    %9 = vector.load %arg4[%c0_9, %c0_10] : memref<324x100xf32, #tpu.memory_space<vmem>>, vector<324x100xf32>
    %cst_11 = arith.constant dense<0.000000e+00> : vector<32x100xf32>
    %10 = tpu.matmul %6, %9, %cst_11 {dimension_numbers = #tpu.dot_dimension_numbers<[1], [0], [0], [1], [0, 0, 1, 1], [], []>} : vector<32x324xf32>, vector<324x100xf32>, vector<32x100xf32> -> vector<32x100xf32>
    %c0_12 = arith.constant 0 : index
    %c0_13 = arith.constant 0 : index
    %11 = vector.load %arg5[%c0_12, %c0_13] : memref<324x100xf32, #tpu.memory_space<vmem>>, vector<324x100xf32>
    %cst_14 = arith.constant dense<0.000000e+00> : vector<32x100xf32>
    %12 = tpu.matmul %6, %11, %cst_14 {dimension_numbers = #tpu.dot_dimension_numbers<[1], [0], [0], [1], [0, 0, 1, 1], [], []>} : vector<32x324xf32>, vector<324x100xf32>, vector<32x100xf32> -> vector<32x100xf32>
    %c0_15 = arith.constant 0 : index
    %c0_16 = arith.constant 0 : index
    %13 = vector.load %arg6[%c0_15, %c0_16] : memref<324x100xf32, #tpu.memory_space<vmem>>, vector<324x100xf32>
    %cst_17 = arith.constant dense<0.000000e+00> : vector<32x100xf32>
    %14 = tpu.matmul %6, %13, %cst_17 {dimension_numbers = #tpu.dot_dimension_numbers<[1], [0], [0], [1], [0, 0, 1, 1], [], []>} : vector<32x324xf32>, vector<324x100xf32>, vector<32x100xf32> -> vector<32x100xf32>
    %15 = arith.maximumf %8, %10 : vector<32x100xf32>
    %16 = arith.maximumf %12, %14 : vector<32x100xf32>
    %17 = arith.maximumf %15, %16 : vector<32x100xf32>
    %c0_18 = arith.constant 0 : index
    %c0_19 = arith.constant 0 : index
    %18 = vector.load %arg7[%c0_18, %c0_19] : memref<100x48xf32, #tpu.memory_space<vmem>>, vector<100x48xf32>
    %cst_20 = arith.constant dense<0.000000e+00> : vector<32x48xf32>
    %19 = tpu.matmul %17, %18, %cst_20 {dimension_numbers = #tpu.dot_dimension_numbers<[1], [0], [0], [1], [0, 0, 1, 1], [], []>} : vector<32x100xf32>, vector<100x48xf32>, vector<32x48xf32> -> vector<32x48xf32>
    %c0_21 = arith.constant 0 : index
    %c0_22 = arith.constant 0 : index
    %20 = vector.load %arg8[%c0_21, %c0_22] : memref<32x48xf32, #tpu.memory_space<vmem>>, vector<32x48xf32>
    %21 = arith.mulf %19, %20 : vector<32x48xf32>
    %c0_23 = arith.constant 0 : index
    %c0_24 = arith.constant 0 : index
    %22 = vector.load %arg9[%c0_23, %c0_24] : memref<2x32xf32, #tpu.memory_space<vmem>>, vector<2x32xf32>
    %cst_25 = arith.constant dense<0.000000e+00> : vector<2x48xf32>
    %23 = tpu.matmul %22, %21, %cst_25 {dimension_numbers = #tpu.dot_dimension_numbers<[1], [0], [0], [1], [0, 0, 1, 1], [], []>} : vector<2x32xf32>, vector<32x48xf32>, vector<2x48xf32> -> vector<2x48xf32>
    %c0_26 = arith.constant 0 : index
    %c0_27 = arith.constant 0 : index
    %24 = vector.load %arg10[%c0_26, %c0_27] : memref<48x3xf32, #tpu.memory_space<vmem>>, vector<48x3xf32>
    %cst_28 = arith.constant dense<0.000000e+00> : vector<2x3xf32>
    %25 = tpu.matmul %23, %24, %cst_28 {dimension_numbers = #tpu.dot_dimension_numbers<[1], [0], [0], [1], [0, 0, 1, 1], [], []>} : vector<2x48xf32>, vector<48x3xf32>, vector<2x3xf32> -> vector<2x3xf32>
    %c0_29 = arith.constant 0 : index
    %c0_30 = arith.constant 0 : index
    %26 = vector.load %arg11[%c0_29, %c0_30] : memref<1x3xf32, #tpu.memory_space<vmem>>, vector<1x3xf32>
    %27 = vector.broadcast %26 : vector<1x3xf32> to vector<2x3xf32>
    %28 = arith.addf %25, %27 : vector<2x3xf32>
    %c0_31 = arith.constant 0 : index
    %c0_32 = arith.constant 0 : index
    %29 = vector.load %arg12[%c0_31, %c0_32] : memref<2x3xf32, #tpu.memory_space<vmem>>, vector<2x3xf32>
    tpu.vector_store %arg12[%c0_31, %c0_32], %28 {strides = array<i32>} : memref<2x3xf32, #tpu.memory_space<vmem>>, vector<2x3xf32>,
    return
  }
}

</mosaic_0001>

<bundles_post_ra>
// kernel: two_inputs_forward.5
= control target key start
LH: loop header
LB: loop body
LE: loop exit
PB: predicated region body
PF: predicated region fallthrough
CT: control target
= control target key end

     0   :  { %vm42_vm0 = vcmask 1042432   ;;  %v359_v3 = vmov 0.0   ;;  %v360_v8 = vmov 0   ;;  %vm361_vm1 = vmmov 1   ;;  %s491_s1 = inlined_call_operand.vmem [shape: f32[27,578], index: 1, kind: input, shape index: {}]   ;;  %s492_s2 = inlined_call_operand.vmem [shape: f32[8,1], index: 2, kind: input, shape index: {}]   ;;  %s493_s0 = inlined_call_operand.vmem [shape: f32[8,27], index: 0, kind: input, shape index: {}]   ;;  %s494_s3 = inlined_call_operand.vmem [shape: f32[8,1], index: 3, kind: input, shape index: {}]   ;;  %s495_s4 = inlined_call_operand.vmem [shape: f32[8,578], index: 4, kind: output, shape index: {}]  }
   0x1   :  { %v19_v0 = vld [vmem:[%s491_s1 + $0x8] sm:$0xff]  ;;  %v24_v1 = vld [vmem:[%s491_s1 + $0x30] sm:$0xff]  ;;  %v18_v2 = vld [vmem:[%s491_s1] sm:$0xff]  ;;  %122 = vmatprep.mubr.f32.mxu0 %v359_v3  ;;  %193 = vmatprep.mubr.f32.mxu1 %v359_v3  ;;  %vm38_vm3 = vcmask 220160   ;;  %v362_v32 = vmov 0.0|0.0   ;;  %vm363_vm4 = vmmov 0  }
   0x2   :  { %v326_v4 = vpack.c.bf16 %v24_v1, %v19_v0  ;;  %v23_v5 = vld [vmem:[%s491_s1 + $0x28] sm:$0xff]  ;;  %v21_v6 = vld [vmem:[%s491_s1 + $0x18] sm:$0xff]  ;;  %v26_v7 = vld [vmem:[%s491_s1 + $0x40] sm:$0xff]  ;;  %358 = vset.pattern.permute.xlu0 %v360_v8  ;;  %vm296_vm5 = vcmask 539648  }
   0x3   :  { %v328_v9 = vpack.c.bf16 %v23_v5, %v18_v2  ;;  %v336_v10 = vpack.c.bf16 %v26_v7, %v21_v6  ;;  %v29_v11 = vld [vmem:[%s491_s1 + $0x58] sm:$0xff]  ;;  %v34_v12 = vld [vmem:[%s491_s1 + $0x80] sm:$0x7]  ;;  %vm414_vm2 = vmpackc.low %vm42_vm0, %vm361_vm1 }
   0x4   :  { %327 = vmatprep.subr.bf16.mxu0 %v326_v4  ;;  %v330_v14 = vpack.c.bf16 %v34_v12, %v29_v11  ;;  %v20_v15 = vld [vmem:[%s491_s1 + $0x10] sm:$0xff]  ;;  %v25_v16 = vld [vmem:[%s491_s1 + $0x38] sm:$0xff]  ;;  %v31_v20 = vld [vmem:[%s491_s1 + $0x68] sm:$0xff] }
   0x5   :  { %v28_v17 = vld [vmem:[%s491_s1 + $0x50] sm:$0xff]  ;;  %329 = vmatpush1.bf16.msra.mxu0 %v328_v9  ;;  %337 = vmatprep.subr.bf16.mxu1 %v336_v10  ;;  %v338_v18 = vpack.c.bf16 %v25_v16, %v20_v15  ;;  %v33_v19 = vld [vmem:[%s491_s1 + $0x78] sm:$0x7]  ;;  %v30_v24 = vld [vmem:[%s491_s1 + $0x60] sm:$0xff] }
   0x6   :  { %v36_v21 = vld [vmem:[%s491_s1 + $0x90] sm:$0x7]  ;;  %332 = vmatprep.subr.msk.bf16.mxu0 %vm414_vm2, %v330_v14  ;;  %v333_v22 = vpack.c.bf16 %v33_v19, %v28_v17  ;;  %v35_v25 = vld [vmem:[%s491_s1 + $0x88] sm:$0x7]  ;;  %v22_v27 = vld [vmem:[%s491_s1 + $0x20] sm:$0xff] }
   0x7   :  { %v340_v23 = vpack.c.bf16 %v36_v21, %v31_v20  ;;  %339 = vmatpush1.bf16.msra.mxu1 %v338_v18  ;;  %v343_v26 = vpack.c.bf16 %v35_v25, %v30_v24  ;;  %v27_v28 = vld [vmem:[%s491_s1 + $0x48] sm:$0xff]  ;;  %v270_v29 = vld [vmem:[%s492_s2] sm:$0xff]  ;;  %v32_v33 = vld [vmem:[%s491_s1 + $0x70] sm:$0xff] }
   0x8   :  { %v17_v30 = vld [vmem:[%s493_s0] sm:$0xff]  ;;  %v347_v31 = vpack.c.bf16 %v27_v28, %v22_v27  ;;  %273 = vperm.xlu0 %358, %v270_v29   ;;  %v37_v34 = vld [vmem:[%s491_s1 + $0x98] sm:$0x7] }
   0x9   :  { %342 = vmatprep.subr.msk.bf16.mxu1 %vm414_vm2, %v340_v23  ;;  %335 = vmatpush1.bf16.msk.msra.mxu0 %vm414_vm2, %v333_v22  ;;  %v281_v35 = vld [vmem:[%s494_s3] sm:$0xff]  ;;  %v350_v36 = vpack.c.bf16 %v37_v34, %v32_v33 }
   0xa   :  { %346 = vmatprep.subr.bf16.mxu0 %v362_v32 }
   0xb   :  { %345 = vmatpush1.bf16.msk.msra.mxu1 %vm414_vm2, %v343_v26 }
   0xc   :  { %304 = vmatmul.mubr.msk.f32.vlgmr.msra.gmra.mrb[0].mxu0 %vm38_vm3, %v17_v30  ;;  %284 = vperm.xlu0 %358, %v281_v35  }
   0xd   :  { %348 = vmatpush3.bf16.msra.mxu0 %v347_v31  ;;  %323 = vmatprep.mubr.msk.f32.mxu0 %vm363_vm4, %v359_v3 }
   0xe   :  { %307 = vmatmul.mubr.msk.f32.vlgmr.msra.gmra.mrb[0].mxu1 %vm38_vm3, %v17_v30  ;;  %349 = vmatprep.subr.bf16.mxu0 %v362_v32 }
  0x11   :  { %352 = vmatpush3.bf16.msk.msra.mxu0 %vm414_vm2, %v350_v36 }
  0x14   :  { %324 = vmatmul.mubr.msk.f32.vlgmr.msra.gmra.mrb[2].mxu0 %vm38_vm3, %v17_v30 }
  0x87   :  { %v274_v37 = vpop.permute.xlu0 %273 }
  0x8b   :  { %v285_v39 = vpop.permute.xlu0 %284 }
  0xdf   :  { %v124_v38 = vpop.f32.mrb[0].mxu0 }
  0xe0   :  { %v276_v40 = vmul.f32 %v274_v37, %v124_v38  ;;  %v126_v41 = vpop.f32.mrb[1].mxu0 }
  0xe1   :  { %v277_v42 = vmul.f32 %v274_v37, %v126_v41  ;;  %v195_v43 = vpop.f32.mrb[0].mxu1 }
  0xe2   :  { %v287_v44 = vadd.f32 %v285_v39, %v276_v40  ;;  %v278_v45 = vmul.f32 %v274_v37, %v195_v43  ;;  %v197_v46 = vpop.f32.mrb[1].mxu1 }
  0xe3   :  { %v288_v47 = vadd.f32 %v285_v39, %v277_v42  ;;  %v279_v48 = vmul.f32 %v274_v37, %v197_v46 }
  0xe4   :  { %292 = vst [vmem:[%s495_s4] sm:$0xff] %v287_v44  ;;  %v289_v49 = vadd.f32 %v285_v39, %v278_v45 }
  0xe5   :  { %293 = vst [vmem:[%s495_s4 + $0x8] sm:$0xff] %v288_v47  ;;  %v290_v50 = vadd.f32 %v285_v39, %v279_v48 }
  0xe6   :  { %294 = vst [vmem:[%s495_s4 + $0x10] sm:$0xff] %v289_v49 }
  0xe7   :  { %295 = vst [vmem:[%s495_s4 + $0x18] sm:$0xff] %v290_v50  ;;  %v266_v51 = vpop.f32.mrb[2].mxu0 }
  0xe8   :  { %v280_v52 = vmul.f32 %v274_v37, %v266_v51  ;;  %v325_v53 = vpop.f32.mrb[3].mxu0 }
  0xea   :  { %v291_v54 = vadd.f32 %v285_v39, %v280_v52 }
  0xec   :  { %297 = vst.msk [vmem:[%s495_s4 + $0x20] sm:$0xff] %vm296_vm5, %v291_v54 }

// kernel: two_inputs_forward.6
= control target key start
LH: loop header
LB: loop body
LE: loop exit
PB: predicated region body
PF: predicated region fallthrough
CT: control target
= control target key end

     0   :  { %v193_v3 = vmov 0.0   ;;  %v194_v8 = vmov 0   ;;  %vm37_vm0 = vcmask 588800   ;;  %s308_s1 = inlined_call_operand.vmem [shape: f32[72,200], index: 1, kind: input, shape index: {}]   ;;  %s309_s2 = inlined_call_operand.vmem [shape: f32[16,1], index: 2, kind: input, shape index: {}]   ;;  %s310_s3 = inlined_call_operand.vmem [shape: f32[16,1], index: 3, kind: input, shape index: {}]   ;;  %s311_s0 = inlined_call_operand.vmem [shape: f32[16,72], index: 0, kind: input, shape index: {}]   ;;  %s312_s4 = inlined_call_operand.vmem [shape: f32[16,200], index: 4, kind: output, shape index: {}]  }
   0x1   :  { %v20_v0 = vld [vmem:[%s308_s1 + $0x8] sm:$0xff]  ;;  %v22_v1 = vld [vmem:[%s308_s1 + $0x18] sm:$0xff]  ;;  %v19_v2 = vld [vmem:[%s308_s1] sm:$0xff]  ;;  %108 = vmatprep.mubr.f32.mxu0 %v193_v3  ;;  %114 = vmatprep.mubr.f32.mxu1 %v193_v3 }
   0x2   :  { %v163_v4 = vpack.c.bf16 %v22_v1, %v20_v0  ;;  %v21_v5 = vld [vmem:[%s308_s1 + $0x10] sm:$0xff]  ;;  %v24_v6 = vld [vmem:[%s308_s1 + $0x28] sm:$0xff]  ;;  %v26_v7 = vld [vmem:[%s308_s1 + $0x38] sm:$0xff]  ;;  %191 = vset.pattern.permute.xlu0 %v194_v8  ;;  %192 = vset.pattern.permute.xlu1 %v194_v8 }
   0x3   :  { %v165_v9 = vpack.c.bf16 %v21_v5, %v19_v2  ;;  %v167_v10 = vpack.c.bf16 %v26_v7, %v24_v6  ;;  %v23_v11 = vld [vmem:[%s308_s1 + $0x20] sm:$0xff]  ;;  %v25_v12 = vld [vmem:[%s308_s1 + $0x30] sm:$0xff]  ;;  %v28_v13 = vld [vmem:[%s308_s1 + $0x48] sm:$0xff] }
   0x4   :  { %164 = vmatprep.subr.bf16.mxu0 %v163_v4  ;;  %179 = vmatprep.subr.bf16.mxu1 %v163_v4  ;;  %v30_v14 = vld [vmem:[%s308_s1 + $0x58] sm:$0xff]  ;;  %v169_v15 = vpack.c.bf16 %v25_v12, %v23_v11  ;;  %v27_v17 = vld [vmem:[%s308_s1 + $0x40] sm:$0xff]  ;;  %v29_v18 = vld [vmem:[%s308_s1 + $0x50] sm:$0xff] }
   0x5   :  { %166 = vmatpush1.bf16.msra.mxu0 %v165_v9  ;;  %184 = vmatpush1.bf16.msra.mxu1 %v165_v9  ;;  %v171_v16 = vpack.c.bf16 %v30_v14, %v28_v13  ;;  %v32_v19 = vld [vmem:[%s308_s1 + $0x68] sm:$0xff]  ;;  %v34_v20 = vld [vmem:[%s308_s1 + $0x78] sm:$0xff]  ;;  %v121_v21 = vld [vmem:[%s309_s2] sm:$0xff]  ;;  %v173_v23 = vpack.c.bf16 %v29_v18, %v27_v17 }
   0x6   :  { %168 = vmatprep.subr.bf16.mxu0 %v167_v10  ;;  %180 = vmatprep.subr.bf16.mxu1 %v167_v10  ;;  %v137_v22 = vld [vmem:[%s310_s3] sm:$0xff]  ;;  %v122_v24 = vld [vmem:[%s309_s2 + $0x8] sm:$0xff]  ;;  %v175_v25 = vpack.c.bf16 %v34_v20, %v32_v19  ;;  %v33_v27 = vld [vmem:[%s308_s1 + $0x70] sm:$0xff] }
   0x7   :  { %125 = vperm.xlu0 %191, %v121_v21   ;;  %v31_v26 = vld [vmem:[%s308_s1 + $0x60] sm:$0xff]  ;;  %141 = vperm.xlu1 %192, %v137_v22   ;;  %v138_v28 = vld [vmem:[%s310_s3 + $0x8] sm:$0xff] }
   0x8   :  { %v177_v29 = vpack.c.bf16 %v33_v27, %v31_v26  ;;  %v36_v30 = vld [vmem:[%s308_s1 + $0x88] sm:$0xff]  ;;  %v35_v31 = vld [vmem:[%s308_s1 + $0x80] sm:$0xff] }
   0x9   :  { %170 = vmatpush1.bf16.msra.mxu0 %v169_v15  ;;  %185 = vmatpush1.bf16.msra.mxu1 %v169_v15  ;;  %v17_v32 = vld [vmem:[%s311_s0] sm:$0xff]  ;;  %v18_v33 = vld [vmem:[%s311_s0 + $0x8] sm:$0xff] }
   0xa   :  { %172 = vmatprep.subr.bf16.mxu0 %v171_v16  ;;  %181 = vmatprep.subr.bf16.mxu1 %v171_v16 }
   0xb   :  { %130 = vperm.xlu0 %191, %v122_v24   ;;  %146 = vperm.xlu1 %192, %v138_v28  }
   0xd   :  { %174 = vmatpush1.bf16.msra.mxu0 %v173_v23  ;;  %186 = vmatpush1.bf16.msra.mxu1 %v173_v23 }
   0xe   :  { %176 = vmatprep.subr.bf16.mxu0 %v175_v25  ;;  %182 = vmatprep.subr.bf16.mxu1 %v175_v25 }
  0x11   :  { %178 = vmatpush1.bf16.msra.mxu0 %v177_v29  ;;  %187 = vmatpush1.bf16.msra.mxu1 %v177_v29 }
  0x12   :  { %60 = vmatprep.subr.mxu0 %v36_v30  ;;  %183 = vmatprep.subr.mxu1 %v36_v30 }
  0x15   :  { %61 = vmatpush1.msra.mxu0 %v35_v31  ;;  %188 = vmatpush1.msra.mxu1 %v35_v31 }
  0x16   :  { %161 = vmatmul.mubr.msk.f32.vlgmr.msra.gmra.mrb[0].mxu0 %vm37_vm0, %v17_v32  ;;  %162 = vmatmul.mubr.msk.f32.vlgmr.msra.gmra.mrb[0].mxu1 %vm37_vm0, %v18_v33 }
  0x86   :  { %v126_v34 = vpop.permute.xlu0 %125  ;;  %v142_v35 = vpop.permute.xlu1 %141 }
  0x8a   :  { %v131_v36 = vpop.permute.xlu0 %130  ;;  %v147_v43 = vpop.permute.xlu1 %146 }
  0xe9   :  { %v110_v37 = vpop.f32.mrb[0].mxu0  ;;  %v116_v38 = vpop.f32.mrb[0].mxu1 }
  0xea   :  { %v133_v39 = vmul.f32 %v126_v34, %v110_v37  ;;  %v135_v40 = vmul.f32 %v131_v36, %v116_v38  ;;  %v112_v41 = vpop.f32.mrb[1].mxu0  ;;  %v118_v42 = vpop.f32.mrb[1].mxu1 }
  0xeb   :  { %v134_v44 = vmul.f32 %v126_v34, %v112_v41  ;;  %v136_v45 = vmul.f32 %v131_v36, %v118_v42 }
  0xec   :  { %v149_v46 = vadd.f32 %v142_v35, %v133_v39  ;;  %v151_v47 = vadd.f32 %v147_v43, %v135_v40 }
  0xed   :  { %v150_v48 = vadd.f32 %v142_v35, %v134_v44  ;;  %v152_v49 = vadd.f32 %v147_v43, %v136_v45 }
  0xee   :  { %153 = vst [vmem:[%s312_s4] sm:$0xff] %v149_v46  ;;  %155 = vst [vmem:[%s312_s4 + $0x10] sm:$0xff] %v151_v47 }
  0xef   :  { %154 = vst.msk [vmem:[%s312_s4 + $0x8] sm:$0xff] %vm37_vm0, %v150_v48  ;;  %156 = vst.msk [vmem:[%s312_s4 + $0x18] sm:$0xff] %vm37_vm0, %v152_v49 }

// kernel: two_inputs_forward.4
= control target key start
LH: loop header
LB: loop body
LE: loop exit
PB: predicated region body
PF: predicated region fallthrough
CT: control target
= control target key end

     0   :  { %vm38_vm0 = vcmask 1043456   ;;  %vm390_vm1 = vmmov 1   ;;  %v391_v3 = vmov 0.0   ;;  %v392_v7 = vmov 0   ;;  %s536_s1 = inlined_call_operand.vmem [shape: f32[12,648], index: 1, kind: input, shape index: {}]   ;;  %s537_s0 = inlined_call_operand.vmem [shape: f32[16,12], index: 0, kind: input, shape index: {}]   ;;  %s538_s2 = inlined_call_operand.vmem [shape: f32[16,1], index: 2, kind: input, shape index: {}]   ;;  %s539_s3 = inlined_call_operand.vmem [shape: f32[16,1], index: 3, kind: input, shape index: {}]   ;;  %s540_s4 = inlined_call_operand.vmem [shape: f32[16,648], index: 4, kind: output, shape index: {}]  }
   0x1   :  { %v20_v0 = vld [vmem:[%s536_s1 + $0x8] sm:$0xff]  ;;  %v26_v1 = vld [vmem:[%s536_s1 + $0x38] sm:$0xf]  ;;  %vm424_vm2 = vmpackc.low %vm38_vm0, %vm390_vm1  ;;  %121 = vmatprep.mubr.f32.mxu0 %v391_v3  ;;  %127 = vmatprep.mubr.f32.mxu1 %v391_v3  ;;  %vm31_vm3 = vcmask 97280   ;;  %vm341_vm4 = vcmask 64512  }
   0x2   :  { %v365_v4 = vpack.c.bf16 %v26_v1, %v20_v0  ;;  %v19_v5 = vld [vmem:[%s536_s1] sm:$0xff]  ;;  %v25_v6 = vld [vmem:[%s536_s1 + $0x30] sm:$0xf]  ;;  %388 = vset.pattern.permute.xlu0 %v392_v7  ;;  %389 = vset.pattern.permute.xlu1 %v392_v7  ;;  %v18_v10 = vld [vmem:[%s537_s0 + $0x8] sm:$0xff] }
   0x3   :  { %v368_v8 = vpack.c.bf16 %v25_v6, %v19_v5  ;;  %v17_v9 = vld [vmem:[%s537_s0] sm:$0xff]  ;;  %v22_v11 = vld [vmem:[%s536_s1 + $0x18] sm:$0xff]  ;;  %v28_v12 = vld [vmem:[%s536_s1 + $0x48] sm:$0xf] }
   0x4   :  { %367 = vmatprep.subr.msk.bf16.mxu0 %vm424_vm2, %v365_v4  ;;  %383 = vmatprep.subr.msk.bf16.mxu1 %vm424_vm2, %v365_v4  ;;  %v371_v13 = vpack.c.bf16 %v28_v12, %v22_v11  ;;  %v24_v14 = vld [vmem:[%s536_s1 + $0x28] sm:$0xff]  ;;  %v30_v15 = vld [vmem:[%s536_s1 + $0x58] sm:$0xf]  ;;  %v21_v16 = vld [vmem:[%s536_s1 + $0x10] sm:$0xff] }
   0x5   :  { %370 = vmatpush1.bf16.msk.msra.mxu0 %vm424_vm2, %v368_v8  ;;  %384 = vmatpush1.bf16.msk.msra.mxu1 %vm424_vm2, %v368_v8  ;;  %v377_v17 = vpack.c.bf16 %v30_v15, %v24_v14  ;;  %v27_v18 = vld [vmem:[%s536_s1 + $0x40] sm:$0xf]  ;;  %v29_v20 = vld [vmem:[%s536_s1 + $0x50] sm:$0xf]  ;;  %v289_v25 = vld [vmem:[%s538_s2 + $0x8] sm:$0xff] }
   0x6   :  { %v23_v19 = vld [vmem:[%s536_s1 + $0x20] sm:$0xff]  ;;  %373 = vmatprep.subr.msk.bf16.mxu1 %vm424_vm2, %v371_v13  ;;  %v374_v21 = vpack.c.bf16 %v27_v18, %v21_v16  ;;  %v313_v26 = vld [vmem:[%s539_s3 + $0x8] sm:$0xff] }
   0x7   :  { %v380_v22 = vpack.c.bf16 %v29_v20, %v23_v19  ;;  %v288_v23 = vld [vmem:[%s538_s2] sm:$0xff]  ;;  %379 = vmatprep.subr.msk.bf16.mxu0 %vm424_vm2, %v377_v17 }
   0x8   :  { %292 = vperm.xlu0 %388, %v288_v23   ;;  %355 = vmatmul.mubr.msk.f32.vlgmr.msra.gmra.mrb[0].mxu0 %vm31_vm3, %v17_v9  ;;  %v312_v24 = vld [vmem:[%s539_s3] sm:$0xff] }
   0x9   :  { %356 = vmatmul.mubr.msk.f32.vlgmr.msra.gmra.mrb[0].mxu1 %vm31_vm3, %v18_v10  ;;  %382 = vmatpush1.bf16.msk.msra.mxu0 %vm424_vm2, %v380_v22 }
   0xa   :  { %376 = vmatpush1.bf16.msk.msra.mxu1 %vm424_vm2, %v374_v21  ;;  %198 = vmatprep.mubr.f32.mxu1 %v391_v3 }
   0xb   :  { %275 = vmatprep.mubr.f32.mxu0 %v391_v3  ;;  %316 = vperm.xlu1 %389, %v312_v24  }
   0xc   :  { %297 = vperm.xlu0 %388, %v289_v25   ;;  %363 = vmatmul.mubr.msk.f32.vlgmr.msra.gmra.mrb[2].mxu0 %vm31_vm3, %v17_v9 }
   0xd   :  { %359 = vmatmul.mubr.msk.f32.vlgmr.msra.gmra.mrb[2].mxu1 %vm31_vm3, %v17_v9  ;;  %281 = vmatprep.mubr.f32.mxu0 %v391_v3 }
   0xe   :  { %204 = vmatprep.mubr.f32.mxu1 %v391_v3 }
   0xf   :  { %321 = vperm.xlu1 %389, %v313_v26  }
  0x10   :  { %364 = vmatmul.mubr.msk.f32.gmra.mrb[4].mxu0 %vm31_vm3, %v18_v10 }
  0x11   :  { %360 = vmatmul.mubr.msk.f32.gmra.mrb[4].mxu1 %vm31_vm3, %v18_v10 }
  0x87   :  { %v293_v27 = vpop.permute.xlu0 %292 }
  0x8a   :  { %v317_v28 = vpop.permute.xlu1 %316 }
  0x8b   :  { %v298_v29 = vpop.permute.xlu0 %297 }
  0x8e   :  { %v322_v30 = vpop.permute.xlu1 %321 }
  0xdb   :  { %v123_v31 = vpop.f32.mrb[0].mxu0 }
  0xdc   :  { %v129_v32 = vpop.f32.mrb[0].mxu1  ;;  %v300_v33 = vmul.f32 %v293_v27, %v123_v31  ;;  %v125_v35 = vpop.f32.mrb[1].mxu0 }
  0xdd   :  { %v306_v34 = vmul.f32 %v298_v29, %v129_v32  ;;  %v131_v36 = vpop.f32.mrb[1].mxu1  ;;  %v301_v37 = vmul.f32 %v293_v27, %v125_v35 }
  0xde   :  { %v307_v38 = vmul.f32 %v298_v29, %v131_v36  ;;  %v324_v39 = vadd.f32 %v317_v28, %v300_v33 }
  0xdf   :  { %v330_v40 = vadd.f32 %v322_v30, %v306_v34  ;;  %v325_v41 = vadd.f32 %v317_v28, %v301_v37  ;;  %v277_v44 = vpop.f32.mrb[2].mxu0 }
  0xe0   :  { %v331_v42 = vadd.f32 %v322_v30, %v307_v38  ;;  %v200_v43 = vpop.f32.mrb[2].mxu1  ;;  %336 = vst [vmem:[%s540_s4] sm:$0xff] %v324_v39  ;;  %v304_v46 = vmul.f32 %v293_v27, %v277_v44  ;;  %v279_v48 = vpop.f32.mrb[3].mxu0 }
  0xe1   :  { %343 = vst [vmem:[%s540_s4 + $0x30] sm:$0xff] %v330_v40  ;;  %v302_v45 = vmul.f32 %v293_v27, %v200_v43  ;;  %v202_v47 = vpop.f32.mrb[3].mxu1  ;;  %337 = vst [vmem:[%s540_s4 + $0x8] sm:$0xff] %v325_v41  ;;  %v305_v50 = vmul.f32 %v293_v27, %v279_v48 }
  0xe2   :  { %344 = vst [vmem:[%s540_s4 + $0x38] sm:$0xff] %v331_v42  ;;  %v303_v49 = vmul.f32 %v293_v27, %v202_v47  ;;  %v328_v52 = vadd.f32 %v317_v28, %v304_v46 }
  0xe3   :  { %v326_v51 = vadd.f32 %v317_v28, %v302_v45  ;;  %v329_v54 = vadd.f32 %v317_v28, %v305_v50  ;;  %v283_v56 = vpop.f32.mrb[4].mxu0 }
  0xe4   :  { %v327_v53 = vadd.f32 %v317_v28, %v303_v49  ;;  %v206_v55 = vpop.f32.mrb[4].mxu1  ;;  %340 = vst [vmem:[%s540_s4 + $0x20] sm:$0xff] %v328_v52  ;;  %v310_v58 = vmul.f32 %v298_v29, %v283_v56  ;;  %v285_v60 = vpop.f32.mrb[5].mxu0 }
  0xe5   :  { %338 = vst [vmem:[%s540_s4 + $0x10] sm:$0xff] %v326_v51  ;;  %v308_v57 = vmul.f32 %v298_v29, %v206_v55  ;;  %v208_v59 = vpop.f32.mrb[5].mxu1  ;;  %342 = vst.msk [vmem:[%s540_s4 + $0x28] sm:$0xff] %vm341_vm4, %v329_v54  ;;  %v311_v62 = vmul.f32 %v298_v29, %v285_v60 }
  0xe6   :  { %339 = vst [vmem:[%s540_s4 + $0x18] sm:$0xff] %v327_v53  ;;  %v309_v61 = vmul.f32 %v298_v29, %v208_v59  ;;  %v334_v0 = vadd.f32 %v322_v30, %v310_v58 }
  0xe7   :  { %v332_v63 = vadd.f32 %v322_v30, %v308_v57  ;;  %v335_v2 = vadd.f32 %v322_v30, %v311_v62 }
  0xe8   :  { %v333_v1 = vadd.f32 %v322_v30, %v309_v61  ;;  %347 = vst [vmem:[%s540_s4 + $0x50] sm:$0xff] %v334_v0 }
  0xe9   :  { %345 = vst [vmem:[%s540_s4 + $0x40] sm:$0xff] %v332_v63  ;;  %348 = vst.msk [vmem:[%s540_s4 + $0x58] sm:$0xff] %vm341_vm4, %v335_v2 }
  0xea   :  { %346 = vst [vmem:[%s540_s4 + $0x48] sm:$0xff] %v333_v1 }

// kernel: tile.17
= control target key start
LH: loop header
LB: loop body
LE: loop exit
PB: predicated region body
PF: predicated region fallthrough
CT: control target
= control target key end

     0   :  { %vm6_vm0 = vcmask 1042434   ;;  %s11_s6 = smov 3  ;;  %s33_s11 = smov 3  ;;  %vm8_vm1 = vcmask 23552   ;;  %vm19_vm2 = vcmask 392552   ;;  %vm30_vm3 = vcmask 367952   ;;  %s367_s0 = inlined_call_operand.vmem [shape: f32[16,3,3], index: 0, kind: input, shape index: {}]   ;;  %s368_s1 = inlined_call_operand.vmem [shape: f32[48,3], index: 1, kind: output, shape index: {}]  }
   0x1   :  { %v183_v0 = vld [vmem:[%s367_s0 + $0x2d] sm:$0x4]   ;;  %v187_v2 = vld [vmem:[%s367_s0 + $0x2b] sm:$0x4]   ;;  %s22_s16 = smov 3  ;;  %s227_s19 = smov 45  }
   0x2   :  { %v182_v1 = vld [vmem:[%s367_s0 + $0xf] ss:$16 sm:%s11_s6]   ;;  %v186_v4 = vld [vmem:[%s367_s0 + $0xd] ss:$16 sm:%s33_s11]   ;;  %s44_s22 = smov 3  ;;  %s228_s25 = smov 39  }
   0x3   :  { %v16_v3 = vsel %vm6_vm0, %v183_v0, %v182_v1  ;;  %v185_v5 = vld [vmem:[%s367_s0 + $0x2c] sm:$0x4]   ;;  %v38_v6 = vsel %vm6_vm0, %v187_v2, %v186_v4  ;;  %v189_v8 = vld [vmem:[%s367_s0 + $0x2a] sm:$0x4]   ;;  %s55_s28 = smov 3  ;;  %s66_s4 = smov 3 }
   0x4   :  { %17 = vrot.lane.b32.xlu0 %v16_v3, %s227_s19  ;;  %v184_v7 = vld [vmem:[%s367_s0 + $0xe] ss:$16 sm:%s22_s16]   ;;  %39 = vrot.lane.b32.xlu1 %v38_v6, %s228_s25  ;;  %s77_s9 = smov 3  ;;  %s229_s10 = smov 42   ;;  %vm41_vm4 = vcmask 343352   ;;  %vm52_vm5 = vcmask 318752  }
   0x5   :  { %v27_v9 = vsel %vm6_vm0, %v185_v5, %v184_v7  ;;  %v188_v10 = vld [vmem:[%s367_s0 + $0xc] ss:$16 sm:%s44_s22]   ;;  %v190_v12 = vld [vmem:[%s367_s0 + $0xb] ss:$16 sm:%s55_s28]   ;;  %s88_s11 = smov 3  ;;  %s230_s12 = smov 36  }
   0x6   :  { %v49_v11 = vsel %vm6_vm0, %v189_v8, %v188_v10  ;;  %v191_v13 = vld [vmem:[%s367_s0 + $0x29] sm:$0x4]   ;;  %v192_v14 = vld [vmem:[%s367_s0 + $0xa] ss:$16 sm:%s66_s4]   ;;  %v195_v19 = vld [vmem:[%s367_s0 + $0x27] sm:$0x4]  }
   0x7   :  { %v193_v15 = vld [vmem:[%s367_s0 + $0x28] sm:$0x4]   ;;  %v60_v16 = vsel %vm6_vm0, %v191_v13, %v190_v12  ;;  %v194_v18 = vld [vmem:[%s367_s0 + $0x9] ss:$16 sm:%s77_s9]   ;;  %v197_v21 = vld [vmem:[%s367_s0 + $0x26] sm:$0x4]  }
   0x8   :  { %28 = vrot.lane.b32.xlu0 %v27_v9, %s229_s10  ;;  %50 = vrot.lane.b32.xlu1 %v49_v11, %s230_s12  ;;  %v71_v17 = vsel %vm6_vm0, %v193_v15, %v192_v14  ;;  %v196_v20 = vld [vmem:[%s367_s0 + $0x8] ss:$16 sm:%s88_s11]   ;;  %s99_s21 = smov 3  ;;  %s231_s22 = smov 33   ;;  %v82_v22 = vsel %vm6_vm0, %v195_v19, %v194_v18  ;;  %vm63_vm6 = vcmask 294152   ;;  %vm74_vm7 = vcmask 269552  }
   0x9   :  { %s110_s23 = smov 3  ;;  %s232_s24 = smov 30   ;;  %v93_v23 = vsel %vm6_vm0, %v197_v21, %v196_v20  ;;  %v198_v24 = vld [vmem:[%s367_s0 + $0x7] ss:$16 sm:%s99_s21]   ;;  %v201_v27 = vld [vmem:[%s367_s0 + $0x24] sm:$0x4]  }
   0xa   :  { %v199_v25 = vld [vmem:[%s367_s0 + $0x25] sm:$0x4]   ;;  %v200_v26 = vld [vmem:[%s367_s0 + $0x6] ss:$16 sm:%s110_s23]   ;;  %s121_s4 = smov 3  ;;  %s233_s5 = smov 27  }
   0xb   :  { %s132_s6 = smov 3  ;;  %s2_s7 = smov 3  ;;  %v181_v28 = vld [vmem:[%s367_s0 + $0x1e] sm:$0x4]   ;;  %v104_v29 = vsel %vm6_vm0, %v199_v25, %v198_v24  ;;  %v115_v31 = vsel %vm6_vm0, %v201_v27, %v200_v26  ;;  %v202_v32 = vld [vmem:[%s367_s0 + $0x5] ss:$16 sm:%s121_s4]  }
   0xc   :  { %61 = vrot.lane.b32.xlu0 %v60_v16, %s231_s22  ;;  %72 = vrot.lane.b32.xlu1 %v71_v17, %s232_s24  ;;  %s234_s10 = smov 24   ;;  %v3_v30 = vld [vmem:[%s367_s0] ss:$16 sm:%s2_s7]   ;;  %s143_s21 = smov 3  ;;  %vm85_vm8 = vcmask 244952   ;;  %vm96_vm9 = vcmask 220352  }
   0xd   :  { %v203_v33 = vld [vmem:[%s367_s0 + $0x23] sm:$0x4]   ;;  %v7_v34 = vsel %vm6_vm0, %v181_v28, %v3_v30  ;;  %v204_v35 = vld [vmem:[%s367_s0 + $0x4] ss:$16 sm:%s132_s6]   ;;  %s235_s22 = smov 21   ;;  %s154_s23 = smov 3 }
   0xe   :  { %v205_v36 = vld [vmem:[%s367_s0 + $0x22] sm:$0x4]   ;;  %9 = vst.msk [vmem:[#allocation0] sm:$0x7] %vm8_vm1, %v7_v34   ;;  %s236_s24 = smov 18   ;;  %v126_v37 = vsel %vm6_vm0, %v203_v33, %v202_v32  ;;  %s165_s4 = smov 3 }
   0xf   :  { %v137_v38 = vsel %vm6_vm0, %v205_v36, %v204_v35  ;;  %v206_v39 = vld [vmem:[%s367_s0 + $0x3] ss:$16 sm:%s143_s21]   ;;  %v208_v41 = vld [vmem:[%s367_s0 + $0x2] ss:$16 sm:%s154_s23]   ;;  %s238_s6 = smov 12   ;;  %s240_s11 = smov 6  }
  0x10   :  { %83 = vrot.lane.b32.xlu0 %v82_v22, %s233_s5  ;;  %94 = vrot.lane.b32.xlu1 %v93_v23, %s234_s10  ;;  %v207_v40 = vld [vmem:[%s367_s0 + $0x21] sm:$0x4]   ;;  %v209_v42 = vld [vmem:[%s367_s0 + $0x20] sm:$0x4]   ;;  %s237_s5 = smov 15   ;;  %s241_s12 = smov 3  }
  0x11   :  { %v148_v43 = vsel %vm6_vm0, %v207_v40, %v206_v39  ;;  %v159_v44 = vsel %vm6_vm0, %v209_v42, %v208_v41  ;;  %v210_v45 = vld [vmem:[%s367_s0 + $0x1] ss:$16 sm:%s165_s4]   ;;  %vm107_vm10 = vcmask 195752   ;;  %vm118_vm11 = vcmask 171152  }
  0x12   :  { %v211_v46 = vld [vmem:[%s367_s0 + $0x1f] sm:$0x4]   ;;  %s239_s0 = smov 9   ;;  %vm129_vm12 = vcmask 146552   ;;  %vm140_vm13 = vcmask 121952   ;;  %vm151_vm14 = vcmask 97352  }
  0x13   :  { %v170_v47 = vsel %vm6_vm0, %v211_v46, %v210_v45  ;;  %vm162_vm15 = vcmask 72752   ;;  %vm173_vm0 = vcmask 48152  }
  0x14   :  { %105 = vrot.lane.b32.xlu0 %v104_v29, %s235_s22  ;;  %116 = vrot.lane.b32.xlu1 %v115_v31, %s236_s24 }
  0x18   :  { %127 = vrot.lane.b32.xlu0 %v126_v37, %s237_s5  ;;  %138 = vrot.lane.b32.xlu1 %v137_v38, %s238_s6 }
  0x1c   :  { %149 = vrot.lane.b32.xlu0 %v148_v43, %s239_s0  ;;  %160 = vrot.lane.b32.xlu1 %v159_v44, %s240_s11 }
  0x20   :  { %171 = vrot.lane.b32.xlu0 %v170_v47, %s241_s12 }
  0x76   :  { %v18_v48 = vpop.permute.xlu0 %17   ;;  %v40_v49 = vpop.permute.xlu1 %39  }
  0x77   :  { %20 = vst.msk [vmem:[#allocation0] sm:$0x7] %vm19_vm2, %v18_v48  }
  0x7a   :  { %v29_v50 = vpop.permute.xlu0 %28   ;;  %v51_v51 = vpop.permute.xlu1 %50  }
  0x7b   :  { %31 = vst.msk [vmem:[#allocation0] sm:$0x7] %vm30_vm3, %v29_v50  }
  0x7c   :  { %42 = vst.msk [vmem:[#allocation0] sm:$0x7] %vm41_vm4, %v40_v49  }
  0x7d   :  { %53 = vst.msk [vmem:[#allocation0] sm:$0x7] %vm52_vm5, %v51_v51  }
  0x7e   :  { %v62_v52 = vpop.permute.xlu0 %61   ;;  %v73_v53 = vpop.permute.xlu1 %72  }
  0x7f   :  { %64 = vst.msk [vmem:[#allocation0] sm:$0x7] %vm63_vm6, %v62_v52  }
  0x80   :  { %75 = vst.msk [vmem:[#allocation0] sm:$0x7] %vm74_vm7, %v73_v53  }
  0x82   :  { %v84_v54 = vpop.permute.xlu0 %83   ;;  %v95_v55 = vpop.permute.xlu1 %94  }
  0x83   :  { %86 = vst.msk [vmem:[#allocation0] sm:$0x7] %vm85_vm8, %v84_v54  }
  0x84   :  { %97 = vst.msk [vmem:[#allocation0] sm:$0x7] %vm96_vm9, %v95_v55  }
  0x86   :  { %v106_v56 = vpop.permute.xlu0 %105   ;;  %v117_v57 = vpop.permute.xlu1 %116  }
  0x87   :  { %108 = vst.msk [vmem:[#allocation0] sm:$0x7] %vm107_vm10, %v106_v56  }
  0x88   :  { %119 = vst.msk [vmem:[#allocation0] sm:$0x7] %vm118_vm11, %v117_v57  }
  0x8a   :  { %v128_v58 = vpop.permute.xlu0 %127   ;;  %v139_v59 = vpop.permute.xlu1 %138  }
  0x8b   :  { %130 = vst.msk [vmem:[#allocation0] sm:$0x7] %vm129_vm12, %v128_v58  }
  0x8c   :  { %141 = vst.msk [vmem:[#allocation0] sm:$0x7] %vm140_vm13, %v139_v59  }
  0x8e   :  { %v150_v60 = vpop.permute.xlu0 %149   ;;  %v161_v61 = vpop.permute.xlu1 %160  }
  0x8f   :  { %152 = vst.msk [vmem:[#allocation0] sm:$0x7] %vm151_vm14, %v150_v60  }
  0x90   :  { %163 = vst.msk [vmem:[#allocation0] sm:$0x7] %vm162_vm15, %v161_v61  }
  0x92   :  { %v172_v62 = vpop.permute.xlu0 %171  }
  0x93   :  { %174 = vst.msk [vmem:[#allocation0] sm:$0x7] %vm173_vm0, %v172_v62  }
  0x9a   :  { %v178_v63 = vld [vmem:[#allocation0] sm:$0xf] }
  0x9b   :  { %180 = vst [vmem:[%s368_s1] sm:$0xf] %v178_v63 }

// kernel: two_inputs_forward.7
= control target key start
LH: loop header
LB: loop body
LE: loop exit
PB: predicated region body
PF: predicated region fallthrough
CT: control target
= control target key end

     0   :  { %v2304_v7 = vmov 0.0   ;;  %vm85_vm0 = vcmask 818176   ;;  %vm98_vm1 = vcmask 1043456   ;;  %s3251_s0 = inlined_call_operand.vmem [shape: f32[32,324], index: 0, kind: input, shape index: {}]   ;;  %s3252_s1 = inlined_call_operand.vmem [shape: f32[32,100], index: 1, kind: input, shape index: {}]   ;;  %s3253_s2 = inlined_call_operand.vmem [shape: f32[100,324], index: 2, kind: input, shape index: {}]   ;;  %s3254_s3 = inlined_call_operand.vmem [shape: f32[324,100], index: 3, kind: input, shape index: {}]   ;;  %s3255_s4 = inlined_call_operand.vmem [shape: f32[324,100], index: 4, kind: input, shape index: {}]   ;;  %s3256_s5 = inlined_call_operand.vmem [shape: f32[324,100], index: 5, kind: input, shape index: {}]   ;;  %s3257_s6 = inlined_call_operand.vmem [shape: f32[324,100], index: 6, kind: input, shape index: {}]   ;;  %s3258_s7 = inlined_call_operand.vmem [shape: f32[100,48], index: 7, kind: input, shape index: {}]   ;;  %s3259_s8 = inlined_call_operand.vmem [shape: f32[32,48], index: 8, kind: input, shape index: {}]   ;;  %s3260_s9 = inlined_call_operand.vmem [shape: f32[2,32], index: 9, kind: input, shape index: {}]   ;;  %s3261_s10 = inlined_call_operand.vmem [shape: f32[48,3], index: 10, kind: input, shape index: {}]   ;;  %s3262_s11 = inlined_call_operand.vmem [shape: f32[1,3], index: 11, kind: input, shape index: {}]   ;;  %s3263_s12 = inlined_call_operand.hbm [shape: f32[2,3], index: 12, kind: output, shape index: {}]  }
   0x1   :  { %v47_v0 = vld [vmem:[%s3253_s2 + $0x8] sm:$0xff]  ;;  %v50_v1 = vld [vmem:[%s3253_s2 + $0x20] sm:$0xff]  ;;  %v48_v2 = vld [vmem:[%s3253_s2 + $0x10] sm:$0xff]  ;;  %172 = vmatprep.mubr.f32.mxu0 %v2304_v7 }
   0x2   :  { %v1997_v3 = vpack.c.bf16 %v50_v1, %v47_v0  ;;  %v51_v4 = vld [vmem:[%s3253_s2 + $0x28] sm:$0xff]  ;;  %v46_v5 = vld [vmem:[%s3253_s2] sm:$0xff]  ;;  %v49_v6 = vld [vmem:[%s3253_s2 + $0x18] sm:$0xff] }
   0x3   :  { %v2021_v8 = vpack.c.bf16 %v51_v4, %v48_v2  ;;  %v1999_v9 = vpack.c.bf16 %v49_v6, %v46_v5  ;;  %v53_v10 = vld [vmem:[%s3253_s2 + $0x38] sm:$0xff]  ;;  %v56_v11 = vld [vmem:[%s3253_s2 + $0x50] sm:$0xff]  ;;  %v54_v12 = vld [vmem:[%s3253_s2 + $0x40] sm:$0xff] }
   0x4   :  { %1998 = vmatprep.subr.bf16.mxu0 %v1997_v3  ;;  %v2001_v13 = vpack.c.bf16 %v56_v11, %v53_v10  ;;  %v57_v14 = vld [vmem:[%s3253_s2 + $0x58] sm:$0xff]  ;;  %v52_v15 = vld [vmem:[%s3253_s2 + $0x30] sm:$0xff]  ;;  %v55_v16 = vld [vmem:[%s3253_s2 + $0x48] sm:$0xff] }
   0x5   :  { %2022 = vmatprep.subr.bf16.mxu1 %v2021_v8  ;;  %2000 = vmatpush1.bf16.msra.mxu0 %v1999_v9  ;;  %v2025_v17 = vpack.c.bf16 %v57_v14, %v54_v12  ;;  %v2003_v18 = vpack.c.bf16 %v55_v16, %v52_v15  ;;  %v59_v19 = vld [vmem:[%s3253_s2 + $0x68] sm:$0xff]  ;;  %v62_v20 = vld [vmem:[%s3253_s2 + $0x80] sm:$0xff]  ;;  %v60_v21 = vld [vmem:[%s3253_s2 + $0x70] sm:$0xff] }
   0x6   :  { %2024 = vmatpush3.bf16.msra.mxu1 %v2021_v8  ;;  %2002 = vmatprep.subr.bf16.mxu0 %v2001_v13  ;;  %v2005_v22 = vpack.c.bf16 %v62_v20, %v59_v19  ;;  %v63_v23 = vld [vmem:[%s3253_s2 + $0x88] sm:$0xff]  ;;  %v58_v24 = vld [vmem:[%s3253_s2 + $0x60] sm:$0xff]  ;;  %v61_v25 = vld [vmem:[%s3253_s2 + $0x78] sm:$0xff] }
   0x7   :  { %2026 = vmatprep.subr.bf16.mxu1 %v2025_v17  ;;  %v2029_v26 = vpack.c.bf16 %v63_v23, %v60_v21  ;;  %v65_v27 = vld [vmem:[%s3253_s2 + $0x98] sm:$0xff]  ;;  %v68_v28 = vld [vmem:[%s3253_s2 + $0xb0] sm:$0xff]  ;;  %v66_v29 = vld [vmem:[%s3253_s2 + $0xa0] sm:$0xff]  ;;  %v2007_v31 = vpack.c.bf16 %v61_v25, %v58_v24 }
   0x8   :  { %v69_v30 = vld [vmem:[%s3253_s2 + $0xb8] sm:$0xff]  ;;  %v2009_v32 = vpack.c.bf16 %v68_v28, %v65_v27  ;;  %v64_v33 = vld [vmem:[%s3253_s2 + $0x90] sm:$0xff]  ;;  %v67_v34 = vld [vmem:[%s3253_s2 + $0xa8] sm:$0xff] }
   0x9   :  { %2004 = vmatpush1.bf16.msra.mxu0 %v2003_v18  ;;  %v2033_v35 = vpack.c.bf16 %v69_v30, %v66_v29  ;;  %v71_v36 = vld [vmem:[%s3253_s2 + $0xc8] sm:$0xff]  ;;  %v74_v37 = vld [vmem:[%s3253_s2 + $0xe0] sm:$0xff]  ;;  %v72_v38 = vld [vmem:[%s3253_s2 + $0xd0] sm:$0xff]  ;;  %v2011_v40 = vpack.c.bf16 %v67_v34, %v64_v33 }
   0xa   :  { %2028 = vmatpush3.bf16.msra.mxu1 %v2025_v17  ;;  %2006 = vmatprep.subr.bf16.mxu0 %v2005_v22  ;;  %v75_v39 = vld [vmem:[%s3253_s2 + $0xe8] sm:$0xff]  ;;  %v2013_v41 = vpack.c.bf16 %v74_v37, %v71_v36  ;;  %v70_v42 = vld [vmem:[%s3253_s2 + $0xc0] sm:$0xff]  ;;  %v73_v43 = vld [vmem:[%s3253_s2 + $0xd8] sm:$0xff] }
   0xb   :  { %2030 = vmatprep.subr.bf16.mxu1 %v2029_v26  ;;  %v42_v44 = vld [vmem:[%s3252_s1] sm:$0xff]  ;;  %v2037_v45 = vpack.c.bf16 %v75_v39, %v72_v38  ;;  %v77_v46 = vld [vmem:[%s3253_s2 + $0xf8] sm:$0xff]  ;;  %v80_v47 = vld [vmem:[%s3253_s2 + $0x110] sm:$0xff]  ;;  %v2015_v50 = vpack.c.bf16 %v73_v43, %v70_v42 }
   0xc   :  { %1837 = vmatprep.mubr.msk.f32.mxu1 %vm85_vm0, %v42_v44  ;;  %v78_v48 = vld [vmem:[%s3253_s2 + $0x100] sm:$0xff]  ;;  %v81_v49 = vld [vmem:[%s3253_s2 + $0x118] sm:$0xff]  ;;  %v2017_v51 = vpack.c.bf16 %v80_v47, %v77_v46  ;;  %v76_v52 = vld [vmem:[%s3253_s2 + $0xf0] sm:$0xff] }
   0xd   :  { %2008 = vmatpush1.bf16.msra.mxu0 %v2007_v31  ;;  %v79_v53 = vld [vmem:[%s3253_s2 + $0x108] sm:$0xff]  ;;  %v2041_v54 = vpack.c.bf16 %v81_v49, %v78_v48  ;;  %v84_v57 = vld [vmem:[%s3253_s2 + $0x130] sm:$0xf]  ;;  %v82_v58 = vld [vmem:[%s3253_s2 + $0x120] sm:$0xf] }
   0xe   :  { %2032 = vmatpush3.bf16.msra.mxu1 %v2029_v26  ;;  %2010 = vmatprep.subr.bf16.mxu0 %v2009_v32  ;;  %v2019_v55 = vpack.c.bf16 %v79_v53, %v76_v52  ;;  %v83_v56 = vld [vmem:[%s3253_s2 + $0x128] sm:$0xf]  ;;  %v334_v59 = vld [vmem:[%s3254_s3 + $0x80] sm:$0xff] }
   0xf   :  { %2034 = vmatprep.subr.bf16.mxu1 %v2033_v35  ;;  %v335_v60 = vld [vmem:[%s3254_s3 + $0x88] sm:$0xff]  ;;  %v318_v61 = vld [vmem:[%s3254_s3] sm:$0xff] }
  0x10   :  { %v319_v62 = vld [vmem:[%s3254_s3 + $0x8] sm:$0xff]  ;;  %v350_v63 = vld [vmem:[%s3254_s3 + $0x100] sm:$0xff] }
  0x11   :  { %2012 = vmatpush1.bf16.msra.mxu0 %v2011_v40  ;;  %v351_v0 = vld [vmem:[%s3254_s3 + $0x108] sm:$0xff] }
  0x12   :  { %2036 = vmatpush3.bf16.msra.mxu1 %v2033_v35  ;;  %2014 = vmatprep.subr.bf16.mxu0 %v2013_v41 }
  0x13   :  { %2038 = vmatprep.subr.bf16.mxu1 %v2037_v45 }
  0x15   :  { %2016 = vmatpush1.bf16.msra.mxu0 %v2015_v50 }
  0x16   :  { %2040 = vmatpush3.bf16.msra.mxu1 %v2037_v45  ;;  %2018 = vmatprep.subr.bf16.mxu0 %v2017_v51 }
  0x17   :  { %2042 = vmatprep.subr.bf16.mxu1 %v2041_v54 }
  0x19   :  { %2020 = vmatpush1.bf16.msra.mxu0 %v2019_v55 }
  0x1a   :  { %2044 = vmatpush3.bf16.msra.mxu1 %v2041_v54  ;;  %1498 = vmatprep.subr.msk.mxu0 %vm98_vm1, %v83_v56 }
  0x1b   :  { %17 = vsyncpa [#allocation3], 0  ;;  %1835 = vmatprep.subr.msk.mxu1 %vm98_vm1, %v84_v57  ;;  %v336_v1 = vld [vmem:[%s3254_s3 + $0x90] sm:$0xff]  ;;  %v337_v2 = vld [vmem:[%s3254_s3 + $0x98] sm:$0xff]  ;;  %v2045_v4 = vpack.c.bf16 %v335_v60, %v334_v59  ;;  %v2047_v5 = vpack.c.bf16 %v319_v62, %v318_v61  ;;  %v2077_v8 = vpack.c.bf16 %v351_v0, %v350_v63  ;;  %vm359_vm2 = vcmask 556032   ;;  %s2307_s17 = smov [#allocation2]  }
  0x1c   :  { %v43_v3 = vld [vmem:[%s3252_s1 + $0x8] sm:$0xff]  ;;  %v320_v6 = vld [vmem:[%s3254_s3 + $0x10] sm:$0xff]  ;;  %v2049_v9 = vpack.c.bf16 %v337_v2, %v336_v1  ;;  %v321_v10 = vld [vmem:[%s3254_s3 + $0x18] sm:$0xff]  ;;  %vm2306_vm3 = vmmov 0   ;;  %vm1321_vm4 = vcmask 261120   ;;  %vm1408_vm5 = vcmask 392192  }
  0x1d   :  { %1499 = vmatpush1.msk.msra.mxu0 %vm98_vm1, %v82_v58  ;;  %v352_v11 = vld [vmem:[%s3254_s3 + $0x110] sm:$0xff]  ;;  %v353_v12 = vld [vmem:[%s3254_s3 + $0x118] sm:$0xff]  ;;  %v338_v14 = vld [vmem:[%s3254_s3 + $0xa0] sm:$0xff]  ;;  %v2051_v17 = vpack.c.bf16 %v321_v10, %v320_v6  ;;  %s1490_s18 = sshll.u32 %s2307_s17, 4  ;;  %vm1482_vm6 = vcmask 17408   ;;  %s1491_s18 = int_to_ptr.vmem [resolvable:$true] %s1490_s18 }
  0x1e   :  { %1836 = vmatpush3.msk.msra.mxu1 %vm98_vm1, %v84_v57  ;;  %1500 = vmatmul.mubr.msk.f32.vlgmr.msra.gmra.mrb[0].mxu0 %vm85_vm0, %v42_v44  ;;  %v44_v13 = vld [vmem:[%s3252_s1 + $0x10] sm:$0xff]  ;;  %v339_v15 = vld [vmem:[%s3254_s3 + $0xa8] sm:$0xff]  ;;  %v45_v16 = vld [vmem:[%s3252_s1 + $0x18] sm:$0xff]  ;;  %v2081_v19 = vpack.c.bf16 %v353_v12, %v352_v11  ;;  %p2285_p1 = scmp.lt.s32.totalorder %s1491_s18, %s1491_s18 }
  0x1f   :  { %1838 = vmatmul.mubr.msk.f32.vlgmr.msra.gmra.mrb[0].mxu1 %vm85_vm0, %v43_v3  ;;  %178 = vmatprep.mubr.f32.mxu0 %v2304_v7  ;;  %v322_v18 = vld [vmem:[%s3254_s3 + $0x20] sm:$0xff]  ;;  %v2053_v20 = vpack.c.bf16 %v339_v15, %v338_v14  ;;  %v323_v21 = vld [vmem:[%s3254_s3 + $0x28] sm:$0xff]  ;;  %v340_v24 = vld [vmem:[%s3254_s3 + $0xb0] sm:$0xff] }
  0x20   :  { %1840 = vmatprep.mubr.msk.f32.mxu1 %vm85_vm0, %v44_v13  ;;  %2046 = vmatprep.subr.bf16.mxu0 %v2045_v4  ;;  %v354_v22 = vld [vmem:[%s3254_s3 + $0x120] sm:$0xff]  ;;  %v355_v23 = vld [vmem:[%s3254_s3 + $0x128] sm:$0xff]  ;;  %v341_v25 = vld [vmem:[%s3254_s3 + $0xb8] sm:$0xff]  ;;  %v2055_v26 = vpack.c.bf16 %v323_v21, %v322_v18 }
  0x21   :  { %2048 = vmatpush3.bf16.msra.mxu0 %v2047_v5  ;;  %2078 = vmatprep.subr.bf16.mxu1 %v2077_v8  ;;  %v2085_v27 = vpack.c.bf16 %v355_v23, %v354_v22  ;;  %v2057_v28 = vpack.c.bf16 %v341_v25, %v340_v24  ;;  %v324_v29 = vld [vmem:[%s3254_s3 + $0x30] sm:$0xff]  ;;  %v325_v30 = vld [vmem:[%s3254_s3 + $0x38] sm:$0xff]  ;;  %v342_v31 = vld [vmem:[%s3254_s3 + $0xc0] sm:$0xff] }
  0x22   :  { %1501 = vmatmul.mubr.msk.f32.gmra.mrb[2].mxu0 %vm85_vm0, %v43_v3  ;;  %2050 = vmatprep.subr.bf16.mxu0 %v2049_v9  ;;  %v343_v32 = vld [vmem:[%s3254_s3 + $0xc8] sm:$0xff]  ;;  %v2059_v33 = vpack.c.bf16 %v325_v30, %v324_v29  ;;  %v326_v35 = vld [vmem:[%s3254_s3 + $0x40] sm:$0xff]  ;;  %v344_v37 = vld [vmem:[%s3254_s3 + $0xd0] sm:$0xff] }
  0x23   :  { %184 = vmatprep.mubr.f32.mxu0 %v2304_v7  ;;  %1841 = vmatmul.mubr.msk.f32.gmra.mrb[2].mxu1 %vm85_vm0, %v45_v16  ;;  %v2061_v34 = vpack.c.bf16 %v343_v32, %v342_v31  ;;  %v327_v36 = vld [vmem:[%s3254_s3 + $0x48] sm:$0xff]  ;;  %v345_v38 = vld [vmem:[%s3254_s3 + $0xd8] sm:$0xff]  ;;  %v328_v41 = vld [vmem:[%s3254_s3 + $0x50] sm:$0xff] }
  0x24   :  { %2080 = vmatpush3.bf16.msra.mxu1 %v2077_v8  ;;  %v2063_v39 = vpack.c.bf16 %v327_v36, %v326_v35  ;;  %v2065_v40 = vpack.c.bf16 %v345_v38, %v344_v37  ;;  %v329_v42 = vld [vmem:[%s3254_s3 + $0x58] sm:$0xff]  ;;  %v346_v43 = vld [vmem:[%s3254_s3 + $0xe0] sm:$0xff]  ;;  %v347_v44 = vld [vmem:[%s3254_s3 + $0xe8] sm:$0xff] }
  0x25   :  { %2052 = vmatpush3.bf16.msra.mxu0 %v2051_v17  ;;  %2082 = vmatprep.subr.bf16.mxu1 %v2081_v19  ;;  %v2067_v45 = vpack.c.bf16 %v329_v42, %v328_v41  ;;  %v2069_v46 = vpack.c.bf16 %v347_v44, %v346_v43  ;;  %v330_v47 = vld [vmem:[%s3254_s3 + $0x60] sm:$0xff]  ;;  %v331_v48 = vld [vmem:[%s3254_s3 + $0x68] sm:$0xff]  ;;  %v356_v50 = vld [vmem:[%s3254_s3 + $0x130] sm:$0xff] }
  0x26   :  { %1502 = vmatmul.mubr.msk.f32.gmra.mrb[4].mxu0 %vm85_vm0, %v44_v13  ;;  %2054 = vmatprep.subr.bf16.mxu0 %v2053_v20  ;;  %v2071_v49 = vpack.c.bf16 %v331_v48, %v330_v47  ;;  %v357_v51 = vld [vmem:[%s3254_s3 + $0x138] sm:$0xff]  ;;  %v348_v53 = vld [vmem:[%s3254_s3 + $0xf0] sm:$0xff]  ;;  %v358_v59 = vld [vmem:[%s3254_s3 + $0x140] sm:$0xf] }
  0x27   :  { %190 = vmatprep.mubr.f32.mxu0 %v2304_v7  ;;  %v2089_v52 = vpack.c.bf16 %v357_v51, %v356_v50  ;;  %v349_v54 = vld [vmem:[%s3254_s3 + $0xf8] sm:$0xff]  ;;  %v332_v56 = vld [vmem:[%s3254_s3 + $0x70] sm:$0xff]  ;;  %v561_v60 = vld [vmem:[%s3255_s4 + $0x80] sm:$0xff] }
  0x28   :  { %2084 = vmatpush3.bf16.msra.mxu1 %v2081_v19  ;;  %v2073_v55 = vpack.c.bf16 %v349_v54, %v348_v53  ;;  %v333_v57 = vld [vmem:[%s3254_s3 + $0x78] sm:$0xff]  ;;  %v562_v61 = vld [vmem:[%s3255_s4 + $0x88] sm:$0xff]  ;;  %v577_v63 = vld [vmem:[%s3255_s4 + $0x100] sm:$0xff] }
  0x29   :  { %2056 = vmatpush3.bf16.msra.mxu0 %v2055_v26  ;;  %2086 = vmatprep.subr.bf16.mxu1 %v2085_v27  ;;  %v2075_v58 = vpack.c.bf16 %v333_v57, %v332_v56  ;;  %v2093_v62 = vpack.c.bf16 %v562_v61, %v561_v60  ;;  %v578_v0 = vld [vmem:[%s3255_s4 + $0x108] sm:$0xff]  ;;  %v282_v2 = vld [vmem:[%s3251_s0] sm:$0xff]  ;;  %v284_v6 = vld [vmem:[%s3251_s0 + $0x10] sm:$0xff] }
  0x2a   :  { %1503 = vmatmul.mubr.msk.f32.gmra.mrb[6].mxu0 %vm85_vm0, %v45_v16  ;;  %2058 = vmatprep.subr.bf16.mxu0 %v2057_v28  ;;  %v2125_v1 = vpack.c.bf16 %v578_v0, %v577_v63  ;;  %v287_v3 = vld [vmem:[%s3251_s0 + $0x28] sm:$0xff]  ;;  %v285_v11 = vld [vmem:[%s3251_s0 + $0x18] sm:$0xff]  ;;  %v286_v12 = vld [vmem:[%s3251_s0 + $0x20] sm:$0xff] }
  0x2b   :  { %v283_v4 = vld [vmem:[%s3251_s0 + $0x8] sm:$0xff]  ;;  %v545_v13 = vld [vmem:[%s3255_s4] sm:$0xff]  ;;  %v579_v18 = vld [vmem:[%s3255_s4 + $0x110] sm:$0xff] }
  0x2c   :  { %2088 = vmatpush3.bf16.msra.mxu1 %v2085_v27  ;;  %v546_v17 = vld [vmem:[%s3255_s4 + $0x8] sm:$0xff]  ;;  %v580_v19 = vld [vmem:[%s3255_s4 + $0x118] sm:$0xff]  ;;  %v563_v22 = vld [vmem:[%s3255_s4 + $0x90] sm:$0xff] }
  0x2d   :  { %2060 = vmatpush3.bf16.msra.mxu0 %v2059_v33  ;;  %2090 = vmatprep.subr.bf16.mxu1 %v2089_v52  ;;  %v564_v23 = vld [vmem:[%s3255_s4 + $0x98] sm:$0xff]  ;;  %v290_v27 = vld [vmem:[%s3251_s0 + $0x40] sm:$0xff]  ;;  %v2095_v31 = vpack.c.bf16 %v546_v17, %v545_v13  ;;  %v288_v32 = vld [vmem:[%s3251_s0 + $0x30] sm:$0xff]  ;;  %v2129_v33 = vpack.c.bf16 %v580_v19, %v579_v18 }
  0x2e   :  { %2062 = vmatprep.subr.bf16.mxu0 %v2061_v34  ;;  %v293_v24 = vld [vmem:[%s3251_s0 + $0x58] sm:$0xff]  ;;  %v547_v34 = vld [vmem:[%s3255_s4 + $0x10] sm:$0xff]  ;;  %v2097_v38 = vpack.c.bf16 %v564_v23, %v563_v22  ;;  %v582_v41 = vld [vmem:[%s3255_s4 + $0x128] sm:$0xff] }
  0x2f   :  { %v566_v47 = vld [vmem:[%s3255_s4 + $0xa8] sm:$0xff]  ;;  %v549_v57 = vld [vmem:[%s3255_s4 + $0x20] sm:$0xff]  ;;  %v584_v63 = vld [vmem:[%s3255_s4 + $0x138] sm:$0xff] }
  0x30   :  { %2092 = vmatpush3.bf16.msra.mxu1 %v2089_v52  ;;  %v550_v61 = vld [vmem:[%s3255_s4 + $0x28] sm:$0xff]  ;;  %v551_v13 = vld [vmem:[%s3255_s4 + $0x30] sm:$0xff]  ;;  %v553_v23 = vld [vmem:[%s3255_s4 + $0x40] sm:$0xff] }
  0x31   :  { %2064 = vmatpush3.bf16.msra.mxu0 %v2063_v39  ;;  %1859 = vmatprep.subr.msk.mxu1 %vm98_vm1, %v358_v59  ;;  %v548_v39 = vld [vmem:[%s3255_s4 + $0x18] sm:$0xff]  ;;  %v570_v17 = vld [vmem:[%s3255_s4 + $0xc8] sm:$0xff] }
  0x32   :  { %2066 = vmatprep.subr.bf16.mxu0 %v2065_v40  ;;  %v581_v40 = vld [vmem:[%s3255_s4 + $0x120] sm:$0xff]  ;;  %v2099_v54 = vpack.c.bf16 %v548_v39, %v547_v34  ;;  %v777_v34 = vld [vmem:[%s3256_s5 + $0x90] sm:$0xff] }
  0x33   :  { %v2133_v56 = vpack.c.bf16 %v582_v41, %v581_v40  ;;  %v555_v39 = vld [vmem:[%s3255_s4 + $0x50] sm:$0xff]  ;;  %v556_v40 = vld [vmem:[%s3255_s4 + $0x58] sm:$0xff] }
  0x34   :  { %1860 = vmatpush3.msk.msra.mxu1 %vm98_vm1, %v358_v59 }
  0x35   :  { %2068 = vmatpush3.bf16.msra.mxu0 %v2067_v45  ;;  %2094 = vmatprep.subr.bf16.mxu1 %v2093_v62  ;;  %v289_v45 = vld [vmem:[%s3251_s0 + $0x38] sm:$0xff]  ;;  %v583_v62 = vld [vmem:[%s3255_s4 + $0x130] sm:$0xff] }
  0x36   :  { %2070 = vmatprep.subr.bf16.mxu0 %v2069_v46  ;;  %v565_v46 = vld [vmem:[%s3255_s4 + $0xa0] sm:$0xff] }
  0x37   :  { %v2101_v60 = vpack.c.bf16 %v566_v47, %v565_v46  ;;  %v761_v46 = vld [vmem:[%s3256_s5 + $0x10] sm:$0xff]  ;;  %v762_v47 = vld [vmem:[%s3256_s5 + $0x18] sm:$0xff] }
  0x39   :  { %2072 = vmatpush3.bf16.msra.mxu0 %v2071_v49 }
  0x3a   :  { %2074 = vmatprep.subr.bf16.mxu0 %v2073_v55  ;;  %v291_v55 = vld [vmem:[%s3251_s0 + $0x48] sm:$0xff] }
  0x3d   :  { %2076 = vmatpush3.bf16.msra.mxu0 %v2075_v58 }
  0x3e   :  { %2126 = vmatprep.subr.bf16.mxu0 %v2125_v1 }
  0xf1   :  { %v174_v5 = vpop.f32.mrb[0].mxu0 }
  0xf2   :  { %v294_v8 = vadd.f32 %v282_v2, %v174_v5  ;;  %v1839_v9 = vpop.f32.mrb[0].mxu1  ;;  %v176_v10 = vpop.f32.mrb[1].mxu0  ;;  %v567_v2 = vld [vmem:[%s3255_s4 + $0xb0] sm:$0xff] }
  0xf3   :  { %v299_v14 = vadd.f32 %v1839_v9, %v287_v3  ;;  %v295_v15 = vadd.f32 %v283_v4, %v176_v10  ;;  %v263_v16 = vpop.f32.mrb[1].mxu1  ;;  %v568_v3 = vld [vmem:[%s3255_s4 + $0xb8] sm:$0xff]  ;;  %v2103_v9 = vpack.c.bf16 %v550_v61, %v549_v57  ;;  %v2137_v10 = vpack.c.bf16 %v584_v63, %v583_v62  ;;  %v575_v57 = vld [vmem:[%s3255_s4 + $0xf0] sm:$0xff]  ;;  %v763_v61 = vld [vmem:[%s3256_s5 + $0x20] sm:$0xff] }
  0xf4   :  { %v2685_v20 = vmax.f32 %v294_v8, 0.0  ;;  %v296_v21 = vadd.f32 %v284_v6, %v263_v16  ;;  %v569_v16 = vld [vmem:[%s3255_s4 + $0xc0] sm:$0xff]  ;;  %v764_v62 = vld [vmem:[%s3256_s5 + $0x28] sm:$0xff] }
  0xf5   :  { %v2696_v25 = vmax.f32 %v295_v15, 0.0  ;;  %v180_v26 = vpop.f32.mrb[2].mxu0  ;;  %v2709_v36 = vmax.f32 %v299_v14, 0.0  ;;  %v552_v14 = vld [vmem:[%s3255_s4 + $0x38] sm:$0xff]  ;;  %v2109_v22 = vpack.c.bf16 %v570_v17, %v569_v16  ;;  %v783_v16 = vld [vmem:[%s3256_s5 + $0xc0] sm:$0xff]  ;;  %v784_v17 = vld [vmem:[%s3256_s5 + $0xc8] sm:$0xff] }
  0xf6   :  { %v2701_v28 = vmax.f32 %v296_v21, 0.0  ;;  %v297_v29 = vadd.f32 %v285_v11, %v180_v26  ;;  %v182_v30 = vpop.f32.mrb[3].mxu0  ;;  %v1842_v35 = vpop.f32.mrb[2].mxu1  ;;  %v2107_v19 = vpack.c.bf16 %v552_v14, %v551_v13  ;;  %v585_v21 = vld [vmem:[%s3255_s4 + $0x140] sm:$0xf]  ;;  %v766_v13 = vld [vmem:[%s3256_s5 + $0x38] sm:$0xff] }
  0xf7   :  { %v298_v37 = vadd.f32 %v286_v12, %v182_v30  ;;  %439 = vmatprep.mubr.f32.mxu0 %v2696_v25  ;;  %v305_v42 = vadd.f32 %v1842_v35, %v293_v24  ;;  %v273_v43 = vpop.f32.mrb[3].mxu1  ;;  %v2105_v12 = vpack.c.bf16 %v568_v3, %v567_v2  ;;  %v554_v24 = vld [vmem:[%s3255_s4 + $0x48] sm:$0xff]  ;;  %v775_v26 = vld [vmem:[%s3256_s5 + $0x80] sm:$0xff]  ;;  %v572_v30 = vld [vmem:[%s3255_s4 + $0xd8] sm:$0xff] }
  0xf8   :  { %v2721_v44 = vmax.f32 %v297_v29, 0.0  ;;  %1861 = vmatprep.mubr.msk.f32.mxu1 %vm359_vm2, %v2701_v28  ;;  %440 = vmatmul.mubr.f32.vlgmr.msra.gmra.mrb[8].mxu0 %v2685_v20  ;;  %v302_v48 = vadd.f32 %v290_v27, %v273_v43  ;;  %v776_v27 = vld [vmem:[%s3256_s5 + $0x88] sm:$0xff]  ;;  %v571_v29 = vld [vmem:[%s3255_s4 + $0xd0] sm:$0xff]  ;;  %v778_v35 = vld [vmem:[%s3256_s5 + $0x98] sm:$0xff] }
  0xf9   :  { %v2735_v49 = vmax.f32 %v298_v37, 0.0  ;;  %1862 = vmatmul.mubr.msk.f32.vlgmr.msra.gmra.mrb[4].mxu1 %vm359_vm2, %v2709_v36  ;;  %2128 = vmatpush3.bf16.msra.mxu0 %v2125_v1  ;;  %v186_v50 = vpop.f32.mrb[4].mxu0  ;;  %v2739_v51 = vmax.f32 %v305_v42, 0.0  ;;  %v292_v1 = vld [vmem:[%s3251_s0 + $0x50] sm:$0xff]  ;;  %v2141_v37 = vpack.c.bf16 %v776_v27, %v775_v26  ;;  %v573_v42 = vld [vmem:[%s3255_s4 + $0xe0] sm:$0xff]  ;;  %v574_v43 = vld [vmem:[%s3255_s4 + $0xe8] sm:$0xff] }
  0xfa   :  { %2096 = vmatpush3.bf16.msra.mxu1 %v2095_v31  ;;  %v300_v52 = vadd.f32 %v288_v32, %v186_v50  ;;  %v188_v53 = vpop.f32.mrb[5].mxu0  ;;  %2130 = vmatprep.subr.bf16.mxu0 %v2129_v33  ;;  %v2747_v58 = vmax.f32 %v302_v48, 0.0  ;;  %v759_v31 = vld [vmem:[%s3256_s5] sm:$0xff]  ;;  %v760_v32 = vld [vmem:[%s3256_s5 + $0x8] sm:$0xff]  ;;  %v2115_v48 = vpack.c.bf16 %v556_v40, %v555_v39  ;;  %v782_v2 = vld [vmem:[%s3256_s5 + $0xb8] sm:$0xff] }
  0xfb   :  { %v301_v59 = vadd.f32 %v289_v45, %v188_v53  ;;  %444 = vmatprep.mubr.f32.mxu0 %v2735_v49  ;;  %2098 = vmatprep.subr.bf16.mxu1 %v2097_v38  ;;  %v2113_v38 = vpack.c.bf16 %v572_v30, %v571_v29  ;;  %v2143_v41 = vpack.c.bf16 %v760_v32, %v759_v31  ;;  %v779_v50 = vld [vmem:[%s3256_s5 + $0xa0] sm:$0xff]  ;;  %v768_v27 = vld [vmem:[%s3256_s5 + $0x48] sm:$0xff]  ;;  %v785_v29 = vld [vmem:[%s3256_s5 + $0xd0] sm:$0xff] }
  0xfc   :  { %v2759_v0 = vmax.f32 %v300_v52, 0.0  ;;  %445 = vmatmul.mubr.f32.gmra.mrb[10].mxu0 %v2721_v44  ;;  %1864 = vmatprep.mubr.msk.f32.mxu1 %vm359_vm2, %v2747_v58  ;;  %v2145_v45 = vpack.c.bf16 %v778_v35, %v777_v34  ;;  %v780_v52 = vld [vmem:[%s3256_s5 + $0xa8] sm:$0xff]  ;;  %v2117_v53 = vpack.c.bf16 %v574_v43, %v573_v42  ;;  %v767_v26 = vld [vmem:[%s3256_s5 + $0x40] sm:$0xff]  ;;  %v786_v30 = vld [vmem:[%s3256_s5 + $0xd8] sm:$0xff] }
  0xfd   :  { %v2773_v4 = vmax.f32 %v301_v59, 0.0  ;;  %2132 = vmatpush3.bf16.msra.mxu0 %v2129_v33  ;;  %v192_v5 = vpop.f32.mrb[6].mxu0  ;;  %1865 = vmatmul.mubr.msk.f32.gmra.mrb[6].mxu1 %vm359_vm2, %v2739_v51  ;;  %v2111_v33 = vpack.c.bf16 %v554_v24, %v553_v23  ;;  %v576_v59 = vld [vmem:[%s3255_s4 + $0xf8] sm:$0xff]  ;;  %v2157_v24 = vpack.c.bf16 %v784_v17, %v783_v16  ;;  %v2159_v32 = vpack.c.bf16 %v768_v27, %v767_v26  ;;  %v796_v34 = vld [vmem:[%s3256_s5 + $0x128] sm:$0xff]  ;;  %v787_v39 = vld [vmem:[%s3256_s5 + $0xe0] sm:$0xff] }
  0xfe   :  { %2100 = vmatpush3.bf16.msra.mxu1 %v2099_v54  ;;  %v303_v6 = vadd.f32 %v291_v55, %v192_v5  ;;  %v194_v8 = vpop.f32.mrb[7].mxu0  ;;  %2134 = vmatprep.subr.bf16.mxu0 %v2133_v56  ;;  %v557_v54 = vld [vmem:[%s3255_s4 + $0x60] sm:$0xff]  ;;  %v558_v55 = vld [vmem:[%s3255_s4 + $0x68] sm:$0xff]  ;;  %v2121_v3 = vpack.c.bf16 %v576_v59, %v575_v57  ;;  %v559_v5 = vld [vmem:[%s3255_s4 + $0x70] sm:$0xff]  ;;  %v2161_v35 = vpack.c.bf16 %v786_v30, %v785_v29 }
  0xff   :  { %v304_v11 = vadd.f32 %v292_v1, %v194_v8  ;;  %449 = vmatprep.mubr.f32.mxu0 %v2773_v4  ;;  %2102 = vmatprep.subr.bf16.mxu1 %v2101_v60  ;;  %v2149_v60 = vpack.c.bf16 %v780_v52, %v779_v50  ;;  %v2119_v63 = vpack.c.bf16 %v558_v55, %v557_v54  ;;  %v781_v1 = vld [vmem:[%s3256_s5 + $0xb0] sm:$0xff]  ;;  %v794_v23 = vld [vmem:[%s3256_s5 + $0x118] sm:$0xff]  ;;  %v788_v40 = vld [vmem:[%s3256_s5 + $0xe8] sm:$0xff] }
 0x100   :  { %v2784_v15 = vmax.f32 %v303_v6, 0.0  ;;  %450 = vmatmul.mubr.f32.gmra.mrb[12].mxu0 %v2759_v0  ;;  %653 = vmatprep.mubr.f32.mxu1 %v2696_v25  ;;  %v560_v6 = vld [vmem:[%s3255_s4 + $0x78] sm:$0xff]  ;;  %v2151_v8 = vpack.c.bf16 %v764_v62, %v763_v61  ;;  %v797_v43 = vld [vmem:[%s3256_s5 + $0x130] sm:$0xff]  ;;  %v1005_v59 = vld [vmem:[%s3257_s6 + $0x100] sm:$0xff] }
 0x101   :  { %v2794_v18 = vmax.f32 %v304_v11, 0.0  ;;  %2136 = vmatpush3.bf16.msra.mxu0 %v2133_v56  ;;  %v2147_v56 = vpack.c.bf16 %v762_v47, %v761_v46  ;;  %v2153_v11 = vpack.c.bf16 %v782_v2, %v781_v1  ;;  %v2123_v14 = vpack.c.bf16 %v560_v6, %v559_v5  ;;  %v771_v47 = vld [vmem:[%s3256_s5 + $0x60] sm:$0xff]  ;;  %v789_v50 = vld [vmem:[%s3256_s5 + $0xf0] sm:$0xff]  ;;  %v790_v52 = vld [vmem:[%s3256_s5 + $0xf8] sm:$0xff] }
 0x102   :  { %2104 = vmatpush3.bf16.msra.mxu1 %v2103_v9  ;;  %2138 = vmatprep.subr.bf16.mxu0 %v2137_v10  ;;  %v791_v9 = vld [vmem:[%s3256_s5 + $0x100] sm:$0xff]  ;;  %v2165_v46 = vpack.c.bf16 %v788_v40, %v787_v39  ;;  %v2169_v55 = vpack.c.bf16 %v790_v52, %v789_v50  ;;  %v774_v57 = vld [vmem:[%s3256_s5 + $0x78] sm:$0xff]  ;;  %v990_v1 = vld [vmem:[%s3257_s6 + $0x88] sm:$0xff] }
 0x103   :  { %454 = vmatprep.mubr.f32.mxu0 %v2794_v18  ;;  %2106 = vmatprep.subr.bf16.mxu1 %v2105_v12  ;;  %v765_v12 = vld [vmem:[%s3256_s5 + $0x30] sm:$0xff]  ;;  %v799_v62 = vld [vmem:[%s3256_s5 + $0x140] sm:$0xf]  ;;  %v974_v5 = vld [vmem:[%s3257_s6 + $0x8] sm:$0xff] }
 0x104   :  { %455 = vmatmul.mubr.f32.gmra.mrb[14].mxu0 %v2784_v15  ;;  %v991_v6 = vld [vmem:[%s3257_s6 + $0x90] sm:$0xff]  ;;  %v976_v16 = vld [vmem:[%s3257_s6 + $0x18] sm:$0xff]  ;;  %v993_v17 = vld [vmem:[%s3257_s6 + $0xa0] sm:$0xff] }
 0x105   :  { %2140 = vmatpush3.bf16.msra.mxu0 %v2137_v10  ;;  %1885 = vmatprep.mubr.msk.f32.mxu0 %vm359_vm2, %v2701_v28  ;;  %v792_v10 = vld [vmem:[%s3256_s5 + $0x108] sm:$0xff]  ;;  %v977_v27 = vld [vmem:[%s3257_s6 + $0x20] sm:$0xff]  ;;  %v980_v39 = vld [vmem:[%s3257_s6 + $0x38] sm:$0xff] }
 0x106   :  { %2108 = vmatpush3.bf16.msra.mxu1 %v2107_v19  ;;  %1883 = vmatprep.subr.msk.mxu0 %vm98_vm1, %v585_v21  ;;  %v2173_v19 = vpack.c.bf16 %v792_v10, %v791_v9  ;;  %v978_v29 = vld [vmem:[%s3257_s6 + $0x28] sm:$0xff]  ;;  %v1013_v50 = vld [vmem:[%s3257_s6 + $0x140] sm:$0xf] }
 0x107   :  { %2110 = vmatprep.subr.bf16.mxu1 %v2109_v22  ;;  %v793_v22 = vld [vmem:[%s3256_s5 + $0x110] sm:$0xff] }
 0x108   :  { %v2177_v31 = vpack.c.bf16 %v794_v23, %v793_v22  ;;  %v1009_v22 = vld [vmem:[%s3257_s6 + $0x120] sm:$0xff]  ;;  %v1010_v23 = vld [vmem:[%s3257_s6 + $0x128] sm:$0xff] }
 0x109   :  { %1884 = vmatpush3.msk.msra.mxu0 %vm98_vm1, %v585_v21  ;;  %v2155_v21 = vpack.c.bf16 %v766_v13, %v765_v12  ;;  %v1008_v12 = vld [vmem:[%s3257_s6 + $0x118] sm:$0xff]  ;;  %v2229_v30 = vpack.c.bf16 %v1010_v23, %v1009_v22 }
 0x10a   :  { %2112 = vmatpush3.bf16.msra.mxu1 %v2111_v33  ;;  %1886 = vmatmul.mubr.msk.f32.vlgmr.msra.gmra.mrb[16].mxu0 %vm359_vm2, %v2709_v36  ;;  %v795_v33 = vld [vmem:[%s3256_s5 + $0x120] sm:$0xff] }
 0x10b   :  { %2142 = vmatprep.subr.bf16.mxu0 %v2141_v37  ;;  %2114 = vmatprep.subr.bf16.mxu1 %v2113_v38  ;;  %v769_v37 = vld [vmem:[%s3256_s5 + $0x50] sm:$0xff]  ;;  %v770_v38 = vld [vmem:[%s3256_s5 + $0x58] sm:$0xff] }
 0x10c   :  { %2144 = vmatpush3.bf16.msra.mxu0 %v2143_v41  ;;  %1888 = vmatprep.mubr.msk.f32.mxu0 %vm359_vm2, %v2747_v58  ;;  %v2181_v41 = vpack.c.bf16 %v796_v34, %v795_v33  ;;  %v2163_v42 = vpack.c.bf16 %v770_v38, %v769_v37  ;;  %v1011_v33 = vld [vmem:[%s3257_s6 + $0x130] sm:$0xff]  ;;  %v1012_v34 = vld [vmem:[%s3257_s6 + $0x138] sm:$0xff] }
 0x10d   :  { %2146 = vmatprep.subr.bf16.mxu0 %v2145_v45  ;;  %v798_v45 = vld [vmem:[%s3256_s5 + $0x138] sm:$0xff]  ;;  %v979_v38 = vld [vmem:[%s3257_s6 + $0x30] sm:$0xff]  ;;  %v2233_v40 = vpack.c.bf16 %v1012_v34, %v1011_v33 }
 0x10e   :  { %2116 = vmatpush3.bf16.msra.mxu1 %v2115_v48  ;;  %1889 = vmatmul.mubr.msk.f32.gmra.mrb[18].mxu0 %vm359_vm2, %v2739_v51  ;;  %v772_v48 = vld [vmem:[%s3256_s5 + $0x68] sm:$0xff] }
 0x10f   :  { %867 = vmatprep.mubr.f32.mxu0 %v2696_v25  ;;  %2118 = vmatprep.subr.bf16.mxu1 %v2117_v53  ;;  %v2185_v53 = vpack.c.bf16 %v798_v45, %v797_v43  ;;  %v2167_v54 = vpack.c.bf16 %v772_v48, %v771_v47  ;;  %v981_v45 = vld [vmem:[%s3257_s6 + $0x40] sm:$0xff]  ;;  %v999_v47 = vld [vmem:[%s3257_s6 + $0xd0] sm:$0xff]  ;;  %v1000_v48 = vld [vmem:[%s3257_s6 + $0xd8] sm:$0xff] }
 0x110   :  { %2148 = vmatpush3.bf16.msra.mxu0 %v2147_v56  ;;  %v773_v56 = vld [vmem:[%s3256_s5 + $0x70] sm:$0xff] }
 0x111   :  { %2150 = vmatprep.subr.bf16.mxu0 %v2149_v60  ;;  %v1006_v60 = vld [vmem:[%s3257_s6 + $0x108] sm:$0xff]  ;;  %v2171_v61 = vpack.c.bf16 %v774_v57, %v773_v56 }
 0x112   :  { %2120 = vmatpush3.bf16.msra.mxu1 %v2119_v63  ;;  %v989_v63 = vld [vmem:[%s3257_s6 + $0x80] sm:$0xff]  ;;  %v2221_v2 = vpack.c.bf16 %v1006_v60, %v1005_v59  ;;  %v1002_v56 = vld [vmem:[%s3257_s6 + $0xe8] sm:$0xff] }
 0x113   :  { %2122 = vmatprep.subr.bf16.mxu1 %v2121_v3  ;;  %v973_v3 = vld [vmem:[%s3257_s6] sm:$0xff]  ;;  %v2189_v9 = vpack.c.bf16 %v990_v1, %v989_v63  ;;  %v1004_v63 = vld [vmem:[%s3257_s6 + $0xf8] sm:$0xff] }
 0x114   :  { %2152 = vmatpush3.bf16.msra.mxu0 %v2151_v8  ;;  %v992_v8 = vld [vmem:[%s3257_s6 + $0x98] sm:$0xff]  ;;  %v2191_v10 = vpack.c.bf16 %v974_v5, %v973_v3  ;;  %v985_v60 = vld [vmem:[%s3257_s6 + $0x60] sm:$0xff]  ;;  %v987_v3 = vld [vmem:[%s3257_s6 + $0x70] sm:$0xff] }
 0x115   :  { %2154 = vmatprep.subr.bf16.mxu0 %v2153_v11  ;;  %v1007_v11 = vld [vmem:[%s3257_s6 + $0x110] sm:$0xff]  ;;  %v2193_v13 = vpack.c.bf16 %v992_v8, %v991_v6  ;;  %v1206_v8 = vld [vmem:[%s3258_s7 + $0x38] sm:$0xff] }
 0x116   :  { %2124 = vmatpush3.bf16.msra.mxu1 %v2123_v14  ;;  %v975_v14 = vld [vmem:[%s3257_s6 + $0x10] sm:$0xff] }
 0x117   :  { %2174 = vmatprep.subr.bf16.mxu1 %v2173_v19  ;;  %v1205_v6 = vld [vmem:[%s3258_s7 + $0x30] sm:$0xff] }
 0x118   :  { %2156 = vmatpush3.bf16.msra.mxu0 %v2155_v21  ;;  %v2225_v21 = vpack.c.bf16 %v1008_v12, %v1007_v11  ;;  %v1208_v11 = vld [vmem:[%s3258_s7 + $0x48] sm:$0xff] }
 0x119   :  { %654 = vmatmul.mubr.f32.vlgmr.msra.gmra.mrb[8].mxu1 %v2685_v20  ;;  %2158 = vmatprep.subr.bf16.mxu0 %v2157_v24  ;;  %v2195_v24 = vpack.c.bf16 %v976_v16, %v975_v14  ;;  %v1210_v14 = vld [vmem:[%s3258_s7 + $0x58] sm:$0xff] }
 0x11a   :  { %658 = vmatprep.mubr.f32.mxu1 %v2735_v49  ;;  %2176 = vmatpush3.bf16.msra.mxu1 %v2173_v19  ;;  %v994_v19 = vld [vmem:[%s3257_s6 + $0xa8] sm:$0xff] }
 0x11b   :  { %2178 = vmatprep.subr.bf16.mxu1 %v2177_v31  ;;  %v2197_v26 = vpack.c.bf16 %v994_v19, %v993_v17  ;;  %v1211_v17 = vld [vmem:[%s3258_s7 + $0x60] sm:$0xf] }
 0x11c   :  { %2160 = vmatpush3.bf16.msra.mxu0 %v2159_v32  ;;  %v996_v32 = vld [vmem:[%s3257_s6 + $0xb8] sm:$0xff] }
 0x11d   :  { %659 = vmatmul.mubr.f32.gmra.mrb[10].mxu1 %v2721_v44  ;;  %2162 = vmatprep.subr.bf16.mxu0 %v2161_v35  ;;  %v2199_v35 = vpack.c.bf16 %v978_v29, %v977_v27 }
 0x11e   :  { %663 = vmatprep.mubr.f32.mxu1 %v2773_v4  ;;  %2180 = vmatpush3.bf16.msra.mxu1 %v2177_v31  ;;  %v995_v31 = vld [vmem:[%s3257_s6 + $0xb0] sm:$0xff] }
 0x11f   :  { %2182 = vmatprep.subr.bf16.mxu1 %v2181_v41  ;;  %v2201_v37 = vpack.c.bf16 %v996_v32, %v995_v31 }
 0x120   :  { %2164 = vmatpush3.bf16.msra.mxu0 %v2163_v42  ;;  %v2203_v42 = vpack.c.bf16 %v980_v39, %v979_v38 }
 0x121   :  { %664 = vmatmul.mubr.f32.gmra.mrb[12].mxu1 %v2759_v0  ;;  %2166 = vmatprep.subr.bf16.mxu0 %v2165_v46  ;;  %v982_v46 = vld [vmem:[%s3257_s6 + $0x48] sm:$0xff] }
 0x122   :  { %668 = vmatprep.mubr.f32.mxu1 %v2794_v18  ;;  %2184 = vmatpush3.bf16.msra.mxu1 %v2181_v41  ;;  %v998_v41 = vld [vmem:[%s3257_s6 + $0xc8] sm:$0xff]  ;;  %v2207_v52 = vpack.c.bf16 %v982_v46, %v981_v45 }
 0x123   :  { %2186 = vmatprep.subr.bf16.mxu1 %v2185_v53 }
 0x124   :  { %2168 = vmatpush3.bf16.msra.mxu0 %v2167_v54  ;;  %v983_v54 = vld [vmem:[%s3257_s6 + $0x50] sm:$0xff] }
 0x125   :  { %669 = vmatmul.mubr.f32.gmra.mrb[14].mxu1 %v2784_v15  ;;  %2170 = vmatprep.subr.bf16.mxu0 %v2169_v55  ;;  %v984_v55 = vld [vmem:[%s3257_s6 + $0x58] sm:$0xff] }
 0x126   :  { %2188 = vmatpush3.bf16.msra.mxu1 %v2185_v53  ;;  %1909 = vmatprep.mubr.msk.f32.mxu1 %vm359_vm2, %v2701_v28  ;;  %v2209_v53 = vpack.c.bf16 %v1000_v48, %v999_v47  ;;  %v2211_v57 = vpack.c.bf16 %v984_v55, %v983_v54 }
 0x127   :  { %1907 = vmatprep.subr.msk.mxu1 %vm98_vm1, %v799_v62 }
 0x128   :  { %2172 = vmatpush3.bf16.msra.mxu0 %v2171_v61  ;;  %v986_v61 = vld [vmem:[%s3257_s6 + $0x68] sm:$0xff] }
 0x129   :  { %2222 = vmatprep.subr.bf16.mxu0 %v2221_v2  ;;  %v2215_v1 = vpack.c.bf16 %v986_v61, %v985_v60 }
 0x12a   :  { %1908 = vmatpush3.msk.msra.mxu1 %vm98_vm1, %v799_v62  ;;  %v1003_v62 = vld [vmem:[%s3257_s6 + $0xf0] sm:$0xff] }
 0x12b   :  { %868 = vmatmul.mubr.f32.vlgmr.msra.gmra.mrb[20].mxu0 %v2685_v20  ;;  %1910 = vmatmul.mubr.msk.f32.vlgmr.msra.gmra.mrb[16].mxu1 %vm359_vm2, %v2709_v36 }
 0x12c   :  { %2190 = vmatprep.subr.bf16.mxu1 %v2189_v9  ;;  %872 = vmatprep.mubr.f32.mxu0 %v2735_v49  ;;  %v2249_v9 = vpack.c.bf16 %v1206_v8, %v1205_v6 }
 0x12d   :  { %1912 = vmatprep.mubr.msk.f32.mxu1 %vm359_vm2, %v2747_v58  ;;  %2192 = vmatpush3.bf16.msra.mxu1 %v2191_v10  ;;  %v1207_v10 = vld [vmem:[%s3258_s7 + $0x40] sm:$0xff] }
 0x12e   :  { %2224 = vmatpush3.bf16.msra.mxu0 %v2221_v2  ;;  %2194 = vmatprep.subr.bf16.mxu1 %v2193_v13  ;;  %v2217_v2 = vpack.c.bf16 %v1004_v63, %v1003_v62  ;;  %v2253_v12 = vpack.c.bf16 %v1208_v11, %v1207_v10  ;;  %v1209_v13 = vld [vmem:[%s3258_s7 + $0x50] sm:$0xff] }
 0x12f   :  { %873 = vmatmul.mubr.f32.gmra.mrb[22].mxu0 %v2721_v44  ;;  %1913 = vmatmul.mubr.msk.f32.gmra.mrb[18].mxu1 %vm359_vm2, %v2739_v51  ;;  %v2257_v16 = vpack.c.bf16 %v1210_v14, %v1209_v13 }
 0x130   :  { %2226 = vmatprep.subr.bf16.mxu0 %v2225_v21  ;;  %877 = vmatprep.mubr.f32.mxu0 %v2773_v4 }
 0x131   :  { %2196 = vmatpush3.bf16.msra.mxu1 %v2195_v24  ;;  %1081 = vmatprep.mubr.f32.mxu1 %v2696_v25  ;;  %v997_v25 = vld [vmem:[%s3257_s6 + $0xc0] sm:$0xff] }
 0x132   :  { %2228 = vmatpush3.bf16.msra.mxu0 %v2225_v21  ;;  %2198 = vmatprep.subr.bf16.mxu1 %v2197_v26  ;;  %v2205_v43 = vpack.c.bf16 %v998_v41, %v997_v25 }
 0x133   :  { %878 = vmatmul.mubr.f32.gmra.mrb[24].mxu0 %v2759_v0  ;;  %2230 = vmatprep.subr.bf16.mxu0 %v2229_v30 }
 0x134   :  { %882 = vmatprep.mubr.f32.mxu0 %v2794_v18 }
 0x135   :  { %2200 = vmatpush3.bf16.msra.mxu1 %v2199_v35 }
 0x136   :  { %2232 = vmatpush3.bf16.msra.mxu0 %v2229_v30  ;;  %2202 = vmatprep.subr.bf16.mxu1 %v2201_v37 }
 0x137   :  { %883 = vmatmul.mubr.f32.gmra.mrb[26].mxu0 %v2784_v15  ;;  %2234 = vmatprep.subr.bf16.mxu0 %v2233_v40 }
 0x138   :  { %1933 = vmatprep.mubr.msk.f32.mxu0 %vm359_vm2, %v2701_v28  ;;  %v1001_v28 = vld [vmem:[%s3257_s6 + $0xe0] sm:$0xff] }
 0x139   :  { %2204 = vmatpush3.bf16.msra.mxu1 %v2203_v42  ;;  %v2213_v59 = vpack.c.bf16 %v1002_v56, %v1001_v28 }
 0x13a   :  { %2236 = vmatpush3.bf16.msra.mxu0 %v2233_v40  ;;  %2206 = vmatprep.subr.bf16.mxu1 %v2205_v43 }
 0x13b   :  { %1931 = vmatprep.subr.msk.mxu0 %vm98_vm1, %v1013_v50 }
 0x13d   :  { %2208 = vmatpush3.bf16.msra.mxu1 %v2207_v52 }
 0x13e   :  { %1932 = vmatpush3.msk.msra.mxu0 %vm98_vm1, %v1013_v50  ;;  %2210 = vmatprep.subr.bf16.mxu1 %v2209_v53 }
 0x13f   :  { %1934 = vmatmul.mubr.msk.f32.vlgmr.msra.gmra.mrb[28].mxu0 %vm359_vm2, %v2709_v36  ;;  %v988_v36 = vld [vmem:[%s3257_s6 + $0x78] sm:$0xff] }
 0x140   :  { %1936 = vmatprep.mubr.msk.f32.mxu0 %vm359_vm2, %v2747_v58  ;;  %v2219_v5 = vpack.c.bf16 %v988_v36, %v987_v3 }
 0x141   :  { %2212 = vmatpush3.bf16.msra.mxu1 %v2211_v57 }
 0x142   :  { %2214 = vmatprep.subr.bf16.mxu1 %v2213_v59 }
 0x143   :  { %1937 = vmatmul.mubr.msk.f32.gmra.mrb[30].mxu0 %vm359_vm2, %v2739_v51  ;;  %v1199_v51 = vld [vmem:[%s3258_s7] sm:$0xff] }
 0x145   :  { %2216 = vmatpush3.bf16.msra.mxu1 %v2215_v1 }
 0x146   :  { %2218 = vmatprep.subr.bf16.mxu1 %v2217_v2 }
 0x149   :  { %2220 = vmatpush3.bf16.msra.mxu1 %v2219_v5 }
 0x14c   :  { %1082 = vmatmul.mubr.f32.vlgmr.msra.gmra.mrb[20].mxu1 %v2685_v20  ;;  %v1200_v20 = vld [vmem:[%s3258_s7 + $0x8] sm:$0xff] }
 0x14d   :  { %1086 = vmatprep.mubr.f32.mxu1 %v2735_v49  ;;  %v2237_v58 = vpack.c.bf16 %v1200_v20, %v1199_v51  ;;  %v1202_v49 = vld [vmem:[%s3258_s7 + $0x18] sm:$0xff] }
 0x14f   :  { %2238 = vmatprep.subr.bf16.mxu0 %v2237_v58 }
 0x150   :  { %1087 = vmatmul.mubr.f32.gmra.mrb[22].mxu1 %v2721_v44  ;;  %2240 = vmatpush3.bf16.msra.mxu0 %v2237_v58  ;;  %v1201_v44 = vld [vmem:[%s3258_s7 + $0x10] sm:$0xff] }
 0x151   :  { %1091 = vmatprep.mubr.f32.mxu1 %v2773_v4  ;;  %v1203_v4 = vld [vmem:[%s3258_s7 + $0x20] sm:$0xff] }
 0x154   :  { %1092 = vmatmul.mubr.f32.gmra.mrb[24].mxu1 %v2759_v0  ;;  %v2241_v0 = vpack.c.bf16 %v1202_v49, %v1201_v44 }
 0x155   :  { %1096 = vmatprep.mubr.f32.mxu1 %v2794_v18 }
 0x156   :  { %2242 = vmatprep.subr.bf16.mxu0 %v2241_v0 }
 0x157   :  { %2244 = vmatpush3.bf16.msra.mxu0 %v2241_v0 }
 0x158   :  { %1097 = vmatmul.mubr.f32.gmra.mrb[26].mxu1 %v2784_v15  ;;  %v1204_v15 = vld [vmem:[%s3258_s7 + $0x28] sm:$0xff] }
 0x159   :  { %v2245_v18 = vpack.c.bf16 %v1204_v15, %v1203_v4  ;;  %1979 = vmatprep.mubr.msk.f32.mxu1 %vm2306_vm3, %v2304_v7 }
 0x15b   :  { %2246 = vmatprep.subr.bf16.mxu0 %v2245_v18 }
 0x15c   :  { %2248 = vmatpush3.bf16.msra.mxu0 %v2245_v18 }
 0x15d   :  { %2250 = vmatprep.subr.bf16.mxu0 %v2249_v9 }
 0x160   :  { %2252 = vmatpush3.bf16.msra.mxu0 %v2249_v9 }
 0x161   :  { %2254 = vmatprep.subr.bf16.mxu0 %v2253_v12 }
 0x164   :  { %2256 = vmatpush3.bf16.msra.mxu0 %v2253_v12 }
 0x165   :  { %2258 = vmatprep.subr.bf16.mxu0 %v2257_v16 }
 0x168   :  { %2260 = vmatpush3.bf16.msra.mxu0 %v2257_v16 }
 0x169   :  { %1963 = vmatprep.subr.msk.mxu0 %vm98_vm1, %v1211_v17 }
 0x16c   :  { %1964 = vmatpush3.msk.msra.mxu0 %vm98_vm1, %v1211_v17 }
 0x1cb   :  { %v1586_v19 = vpop.f32.mrb[8].mxu0 }
 0x1cc   :  { %v1863_v21 = vpop.f32.mrb[4].mxu1  ;;  %v1587_v22 = vpop.f32.mrb[9].mxu0 }
 0x1cd   :  { %v1588_v23 = vadd.f32 %v1587_v22, %v1586_v19  ;;  %v526_v24 = vpop.f32.mrb[5].mxu1 }
 0x1cf   :  { %v3183_v26 = vadd.f32 %v1588_v23, %v526_v24  ;;  %v1589_v27 = vpop.f32.mrb[10].mxu0 }
 0x1d0   :  { %v1590_v29 = vpop.f32.mrb[11].mxu0  ;;  %v1866_v30 = vpop.f32.mrb[6].mxu1 }
 0x1d1   :  { %v1591_v31 = vadd.f32 %v1590_v29, %v1589_v27  ;;  %v536_v32 = vpop.f32.mrb[7].mxu1 }
 0x1d3   :  { %v3185_v33 = vadd.f32 %v1863_v21, %v1591_v31  ;;  %v1592_v34 = vpop.f32.mrb[12].mxu0 }
 0x1d4   :  { %v1593_v35 = vpop.f32.mrb[13].mxu0 }
 0x1d5   :  { %v1594_v37 = vadd.f32 %v1593_v35, %v1592_v34 }
 0x1d7   :  { %v1595_v38 = vpop.f32.mrb[14].mxu0  ;;  %v3187_v39 = vadd.f32 %v1594_v37, %v536_v32 }
 0x1d8   :  { %v1596_v40 = vpop.f32.mrb[15].mxu0 }
 0x1d9   :  { %v1597_v25 = vadd.f32 %v1596_v40, %v1595_v38 }
 0x1db   :  { %v3189_v41 = vadd.f32 %v1866_v30, %v1597_v25 }
 0x1dd   :  { %v1887_v42 = vpop.f32.mrb[16].mxu0 }
 0x1de   :  { %v740_v43 = vpop.f32.mrb[17].mxu0 }
 0x1e1   :  { %v1890_v45 = vpop.f32.mrb[18].mxu0 }
 0x1e2   :  { %v750_v46 = vpop.f32.mrb[19].mxu0 }
 0x1ec   :  { %v1643_v47 = vpop.f32.mrb[8].mxu1 }
 0x1ed   :  { %v1644_v48 = vpop.f32.mrb[9].mxu1 }
 0x1ee   :  { %v1645_v50 = vadd.f32 %v1644_v48, %v1643_v47 }
 0x1f0   :  { %v741_v52 = vadd.f32 %v1645_v50, %v740_v43  ;;  %v1646_v53 = vpop.f32.mrb[10].mxu1 }
 0x1f1   :  { %v1647_v54 = vpop.f32.mrb[11].mxu1 }
 0x1f2   :  { %v1187_v55 = vmax.f32 %v3183_v26, %v741_v52  ;;  %v1648_v28 = vadd.f32 %v1647_v54, %v1646_v53  ;;  %v2305_v54 = vmov 0.0|0.0  }
 0x1f3   :  { %2261 = vmatprep.subr.bf16.mxu1 %v2305_v54 }
 0x1f4   :  { %v746_v56 = vadd.f32 %v1887_v42, %v1648_v28  ;;  %v1649_v57 = vpop.f32.mrb[12].mxu1  ;;  %v1312_v28 = vld [vmem:[%s3259_s8] sm:$0xff] }
 0x1f5   :  { %v1650_v59 = vpop.f32.mrb[13].mxu1 }
 0x1f6   :  { %v1188_v60 = vmax.f32 %v3185_v33, %v746_v56  ;;  %v1651_v61 = vadd.f32 %v1650_v59, %v1649_v57 }
 0x1f8   :  { %v751_v62 = vadd.f32 %v1651_v61, %v750_v46  ;;  %v1652_v63 = vpop.f32.mrb[14].mxu1 }
 0x1f9   :  { %v1653_v1 = vpop.f32.mrb[15].mxu1 }
 0x1fa   :  { %v1189_v2 = vmax.f32 %v3187_v39, %v751_v62  ;;  %v1654_v3 = vadd.f32 %v1653_v1, %v1652_v63  ;;  %v1315_v62 = vld [vmem:[%s3259_s8 + $0x18] sm:$0xff]  ;;  %v1314_v63 = vld [vmem:[%s3259_s8 + $0x10] sm:$0xff] }
 0x1fc   :  { %v756_v36 = vadd.f32 %v1890_v45, %v1654_v3 }
 0x1fe   :  { %v1190_v5 = vmax.f32 %v3189_v41, %v756_v36  ;;  %v1700_v51 = vpop.f32.mrb[20].mxu0  ;;  %v1911_v20 = vpop.f32.mrb[16].mxu1 }
 0x1ff   :  { %v1701_v58 = vpop.f32.mrb[21].mxu0  ;;  %v954_v44 = vpop.f32.mrb[17].mxu1 }
 0x200   :  { %v1702_v49 = vadd.f32 %v1701_v58, %v1700_v51  ;;  %v1396_v51 = vld [vmem:[%s3261_s10 + $0x8] sm:$0xff]  ;;  %v1320_v58 = vld [vmem:[%s3260_s9] sm:$0x3] }
 0x202   :  { %v955_v0 = vadd.f32 %v1702_v49, %v954_v44  ;;  %v1703_v4 = vpop.f32.mrb[22].mxu0  ;;  %v1914_v15 = vpop.f32.mrb[18].mxu1  ;;  %v1397_v49 = vld [vmem:[%s3261_s10 + $0x10] sm:$0xff] }
 0x203   :  { %v1704_v18 = vpop.f32.mrb[23].mxu0  ;;  %v964_v6 = vpop.f32.mrb[19].mxu1 }
 0x204   :  { %v1705_v8 = vadd.f32 %v1704_v18, %v1703_v4  ;;  %v1400_v18 = vld [vmem:[%s3261_s10 + $0x28] sm:$0xff] }
 0x206   :  { %v960_v9 = vadd.f32 %v1911_v20, %v1705_v8  ;;  %v1706_v10 = vpop.f32.mrb[24].mxu0 }
 0x207   :  { %v1707_v11 = vpop.f32.mrb[25].mxu0 }
 0x208   :  { %v1708_v12 = vadd.f32 %v1707_v11, %v1706_v10 }
 0x20a   :  { %v965_v13 = vadd.f32 %v1708_v12, %v964_v6  ;;  %v1709_v14 = vpop.f32.mrb[26].mxu0 }
 0x20b   :  { %v1710_v16 = vpop.f32.mrb[27].mxu0 }
 0x20c   :  { %v1711_v17 = vadd.f32 %v1710_v16, %v1709_v14 }
 0x20e   :  { %v970_v19 = vadd.f32 %v1914_v15, %v1711_v17  ;;  %v1399_v15 = vld [vmem:[%s3261_s10 + $0x20] sm:$0xff] }
 0x20f   :  { %v2274_v6 = vpack.c.bf16 %v1400_v18, %v1399_v15 }
 0x212   :  { %v1935_v21 = vpop.f32.mrb[28].mxu0 }
 0x213   :  { %v1168_v22 = vpop.f32.mrb[29].mxu0 }
 0x216   :  { %v1938_v23 = vpop.f32.mrb[30].mxu0 }
 0x217   :  { %v1178_v24 = vpop.f32.mrb[31].mxu0 }
 0x21f   :  { %v1757_v26 = vpop.f32.mrb[20].mxu1 }
 0x220   :  { %v1758_v27 = vpop.f32.mrb[21].mxu1 }
 0x221   :  { %v1759_v29 = vadd.f32 %v1758_v27, %v1757_v26 }
 0x223   :  { %v1169_v30 = vadd.f32 %v1759_v29, %v1168_v22  ;;  %v1760_v31 = vpop.f32.mrb[22].mxu1 }
 0x224   :  { %v1761_v32 = vpop.f32.mrb[23].mxu1 }
 0x225   :  { %v1191_v33 = vmax.f32 %v955_v0, %v1169_v30  ;;  %v1762_v34 = vadd.f32 %v1761_v32, %v1760_v31  ;;  %v1398_v0 = vld [vmem:[%s3261_s10 + $0x18] sm:$0xff] }
 0x226   :  { %v2271_v4 = vpack.c.bf16 %v1398_v0, %v1397_v49 }
 0x227   :  { %v1195_v35 = vmax.f32 %v1187_v55, %v1191_v33  ;;  %v1174_v37 = vadd.f32 %v1935_v21, %v1762_v34  ;;  %v1763_v38 = vpop.f32.mrb[24].mxu1  ;;  %v1313_v55 = vld [vmem:[%s3259_s8 + $0x8] sm:$0xff] }
 0x228   :  { %v1764_v39 = vpop.f32.mrb[25].mxu1 }
 0x229   :  { %v1192_v40 = vmax.f32 %v960_v9, %v1174_v37  ;;  %v1765_v25 = vadd.f32 %v1764_v39, %v1763_v38  ;;  %1965 = vmatprep.mubr.msk.f32.mxu0 %vm85_vm0, %v1195_v35 }
 0x22b   :  { %v1196_v41 = vmax.f32 %v1188_v60, %v1192_v40  ;;  %v1179_v42 = vadd.f32 %v1765_v25, %v1178_v24  ;;  %v1766_v43 = vpop.f32.mrb[26].mxu1 }
 0x22c   :  { %v1767_v45 = vpop.f32.mrb[27].mxu1 }
 0x22d   :  { %v1193_v46 = vmax.f32 %v965_v13, %v1179_v42  ;;  %v1768_v47 = vadd.f32 %v1767_v45, %v1766_v43  ;;  %1966 = vmatmul.mubr.msk.f32.vlgmr.msra.gmra.mrb[32].mxu0 %vm85_vm0, %v1196_v41 }
 0x22f   :  { %v1197_v48 = vmax.f32 %v1189_v2, %v1193_v46  ;;  %v1184_v50 = vadd.f32 %v1938_v23, %v1768_v47 }
 0x231   :  { %v1194_v52 = vmax.f32 %v970_v19, %v1184_v50  ;;  %1968 = vmatprep.mubr.msk.f32.mxu0 %vm85_vm0, %v1197_v48 }
 0x233   :  { %v1198_v53 = vmax.f32 %v1190_v5, %v1194_v52  ;;  %v1395_v5 = vld [vmem:[%s3261_s10] sm:$0xff]  ;;  %s2280_s10 = scalar_lea.vmem %s1491_s18, 32 }
 0x234   :  { %v2268_v44 = vpack.c.bf16 %v1396_v51, %v1395_v5  ;;  %p2281_p0 = scmp.ne.s32.totalorder %s1491_s18, %s2280_s10  ;;  %p2286_p2 = scmp.lt.s32.totalorder %s2280_s10, %s2280_s10 }
 0x235   :  { %1969 = vmatmul.mubr.msk.f32.gmra.mrb[34].mxu0 %vm85_vm0, %v1198_v53 }
 0x236   :  { %p2287_p3 = por %p2286_p2, %p2285_p1 }
 0x238   :  { %p2288_p4 = pnand %p2287_p3, %p2281_p0 }
 0x300   :  { %v1967_v56 = vpop.f32.mrb[32].mxu0 }
 0x301   :  { %v1317_v57 = vmul.f32 %v1967_v56, %v1313_v55  ;;  %v1293_v59 = vpop.f32.mrb[33].mxu0 }
 0x302   :  { %v1316_v60 = vmul.f32 %v1312_v28, %v1293_v59 }
 0x304   :  { %v2262_v61 = vpack.c.bf16 %v1317_v57, %v1316_v60 }
 0x306   :  { %2263 = vmatpush3.bf16.msra.mxu1 %v2262_v61 }
 0x307   :  { %2264 = vmatprep.subr.bf16.mxu1 %v2305_v54 }
 0x308   :  { %v1970_v1 = vpop.f32.mrb[34].mxu0 }
 0x309   :  { %v1319_v2 = vmul.f32 %v1970_v1, %v1315_v62  ;;  %v1303_v3 = vpop.f32.mrb[35].mxu0 }
 0x30a   :  { %v1318_v36 = vmul.f32 %v1314_v63, %v1303_v3 }
 0x30c   :  { %v2265_v20 = vpack.c.bf16 %v1319_v2, %v1318_v36 }
 0x30e   :  { %2266 = vmatpush3.bf16.msra.mxu1 %v2265_v20 }
 0x30f   :  { %2267 = vmatprep.subr.bf16.mxu1 %v2305_v54 }
 0x311   :  { %1980 = vmatmul.mubr.msk.f32.vlgmr.msra.gmra.mrb[28].mxu1 %vm1321_vm4, %v1320_v58 }
 0x312   :  { %2269 = vmatpush3.bf16.msra.mxu1 %v2268_v44  ;;  %1994 = vmatprep.mubr.msk.f32.mxu1 %vm2306_vm3, %v2304_v7  ;;  %v1535_v7 = vld [vmem:[%s3262_s11] ss:$0 sm:$0xff] }
 0x313   :  { %2270 = vmatprep.subr.bf16.mxu1 %v2305_v54 }
 0x316   :  { %2272 = vmatpush3.bf16.msra.mxu1 %v2271_v4 }
 0x317   :  { %2273 = vmatprep.subr.bf16.mxu1 %v2305_v54 }
 0x31a   :  { %2275 = vmatpush3.bf16.msra.mxu1 %v2274_v6 }
 0x3e4   :  { %v1391_v8 = vpop.f32.mrb[28].mxu1 }
 0x3e5   :  { %v1981_v9 = vpop.f32.mrb[29].mxu1  ;;  %1995 = vmatmul.mubr.msk.f32.vlgmr.msra.gmra.mrb[30].mxu1 %vm1408_vm5, %v1391_v8 }
 0x4b8   :  { %v1478_v10 = vpop.f32.mrb[30].mxu1 }
 0x4b9   :  { %v1479_v11 = vadd.f32 %v1535_v7, %v1478_v10  ;;  %v1996_v12 = vpop.f32.mrb[31].mxu1 }
 0x4bb   :  { %1483 = vst.msk [vmem:[#allocation2] sm:$0x3] %vm1482_vm6, %v1479_v11 }
 0x4bc   :  { %2291 = shalt.err (!%p2288_p4)
}
 0x4bd   :  { %s2292_s7 = scalar_lea.hbm %s3263_s12, 32 }
 0x4be   :  { %p2293_p5 = scmp.ne.s32.totalorder %s3263_s12, %s2292_s7  ;;  %p2296_p6 = scmp.lt.u32.totalorder %s2292_s7, %s3263_s12 }
 0x4c0   :  { %p2298_p7 = pnand %p2296_p6, %p2293_p5 }
 0x4c2   :  { %2301 = shalt.err (!%p2298_p7)
}
 0x4c3   :  { %1493 = dma.vmem_to_hbm [thread:$0]  %s1491_s18, 32, %s3263_s12, [#allocation3]  }
 0x4c4   :  { %2302 = dma.done.wait [#allocation3], 32  }
 0x4c5   :  { %2303 = vsyncadd [#allocation3], 4294967264 }
 0x4c6   :  { %1497 = vsyncpa [#allocation3], 1 }

</bundles_post_ra>
